<compile_context>
chip_gen: v6e
topology: v6e:2x2x1
jax: 0.10.0
libtpu: 0.0.40
codegen_flags: <defaults>
</compile_context>

<pallas_src>
import functools

import jax
import jax.numpy as jnp
import numpy as np
from jax.experimental import pallas as pl
from jax.experimental.pallas import tpu as pltpu


def _conv_rowblock_kernel(w_ref, x_ref, o_ref, *, KH, KW, tH, W, Cin, dil):
    """One (batch, output-row-block) grid step.

    w_ref: (KH*KW, Cout, Cin)  per-tap weight matrices (resident, constant idx)
    x_ref: (1, Cin, Hp, Wp)    full zero-padded input image (resident per n)
    o_ref: (1, Cout, tH*W)     lane-dense flattened-spatial output block
    """
    r = pl.program_id(1)
    h0 = pl.multiple_of(r * tH, tH)          # first output row of this block
    acc = jnp.zeros(o_ref.shape[1:], jnp.float32)
    # On-chip im2col: 9 shifted windows, 9 small MXU dots accumulated in f32.
    for kh in range(KH):
        for kw in range(KW):
            tap = x_ref[0, :, pl.ds(h0 + kh * dil, tH), pl.ds(kw * dil, W)]
            tap = tap.reshape(Cin, tH * W)                 # (Cin, tM)
            acc = acc + jnp.dot(w_ref[kh * KW + kw], tap,
                                preferred_element_type=jnp.float32)
    o_ref[0] = acc.astype(o_ref.dtype)


def _choose_row_tile(H, W, Cin, Cout, Hp, Wp, in_bytes, out_bytes, n_taps,
                     budget=48 << 20):
    """Largest divisor tH of H whose block footprint fits the VMEM budget and
    keeps the output lane dim either full (tH == H) or a multiple of 128."""
    def est(tH):
        img = 2 * Cin * Hp * Wp * in_bytes          # double-buffered image
        out = 2 * Cout * tH * W * out_bytes         # double-buffered out block
        wts = 2 * n_taps * Cout * Cin * in_bytes    # resident weights
        acc = Cout * tH * W * 4                     # f32 accumulator
        return img + out + wts + acc

    divisors = [d for d in range(H, 0, -1) if H % d == 0]
    for tH in divisors:
        if est(tH) <= budget and (tH == H or (tH * W) % 128 == 0):
            return tH, est(tH)
    # Fallback (image alone over budget): full-H block is always layout-legal.
    return H, est(H)


def conv2d_same_pallas(x_nchw, weight_oihw, *, dilation=1, compute_dtype=None):
    """Equivalent of C.forward with module defaults: kSize x kSize conv,
    stride=1, 'same' padding, no bias.  NCHW in / NCHW out."""
    N, Cin, H, W = x_nchw.shape
    Cout, Cin_w, KH, KW = weight_oihw.shape
    assert Cin == Cin_w
    assert KH % 2 == 1 and KW % 2 == 1   # 'same' padding only for odd kernels
    pad_h = (KH - 1) // 2 * dilation
    pad_w = (KW - 1) // 2 * dilation
    out_dtype = x_nchw.dtype

    # bf16 (etc.) on the DMA path: cast BEFORE padding so every HBM byte the
    # kernel reads is narrow; accumulation stays f32 on the MXU.
    if compute_dtype is not None:
        x_nchw = x_nchw.astype(compute_dtype)
        weight_oihw = weight_oihw.astype(compute_dtype)

    xp = jnp.pad(x_nchw, ((0, 0), (0, 0), (pad_h, pad_h), (pad_w, pad_w)))
    Hp, Wp = H + 2 * pad_h, W + 2 * pad_w
    M = H * W

    # Per-tap weight matrices: w_taps[kh*KW + kw] == weight[:, :, kh, kw]
    w_taps = jnp.transpose(weight_oihw, (2, 3, 0, 1)).reshape(KH * KW, Cout, Cin)

    in_b = jnp.dtype(xp.dtype).itemsize
    out_b = jnp.dtype(out_dtype).itemsize
    tH, est = _choose_row_tile(H, W, Cin, Cout, Hp, Wp, in_b, out_b, KH * KW)
    R = H // tH
    tM = tH * W
    vmem_limit = int(min(max(2 * est, 32 << 20), 64 << 20))

    kernel = functools.partial(_conv_rowblock_kernel,
                               KH=KH, KW=KW, tH=tH, W=W, Cin=Cin, dil=dilation)

    out_flat = pl.pallas_call(
        kernel,
        out_shape=jax.ShapeDtypeStruct((N, Cout, M), out_dtype),
        grid=(N, R),
        in_specs=[
            # Per-tap weights: constant index -> resident across the grid.
            pl.BlockSpec((KH * KW, Cout, Cin), lambda n, r: (0, 0, 0)),
            # Full padded image for batch n: resident across the r axis.
            pl.BlockSpec((1, Cin, Hp, Wp), lambda n, r: (n, 0, 0, 0)),
        ],
        out_specs=pl.BlockSpec((1, Cout, tM), lambda n, r: (n, 0, r)),
        compiler_params=pltpu.CompilerParams(
            dimension_semantics=("parallel", "parallel"),
            vmem_limit_bytes=vmem_limit,
        ),
    )(w_taps, xp)

    # NCHW-flat -> NCHW is a pure reshape (no transpose / extra HBM pass).
    return out_flat.reshape(N, Cout, H, W)


if __name__ == "__main__":
    # Module config consistent with the forward: C(nIn=4, nOut=8), kSize=3
    N, Cin, H, W = 2, 4, 16, 16
    Cout, Ksz = 8, 3

    key = jax.random.PRNGKey(0)
    kx, kw_key = jax.random.split(key)
    x = jax.random.normal(kx, (N, Cin, H, W), dtype=jnp.float32)
    fan_in = Cin * Ksz * Ksz
    bound = 1.0 / np.sqrt(fan_in)
    weight = jax.random.uniform(
        kw_key, (Cout, Cin, Ksz, Ksz), minval=-bound, maxval=bound,
        dtype=jnp.float32)

    # f32 path (tight check against XLA conv, same semantics as F.conv2d pad=1)
    out = jax.block_until_ready(conv2d_same_pallas(x, weight))
    ref = jax.lax.conv_general_dilated(
        x, weight, window_strides=(1, 1), padding=((1, 1), (1, 1)),
        dimension_numbers=("NCHW", "OIHW", "NCHW"))
    assert out.shape == (N, Cout, H, W)
    np.testing.assert_allclose(np.asarray(out), np.asarray(ref),
                               rtol=1e-5, atol=1e-5)

    # bf16-compute path (halved DMA bytes, native MXU bf16); compared against
    # a bf16-input reference with f32 accumulation.
    out_bf = jax.block_until_ready(
        conv2d_same_pallas(x, weight, compute_dtype=jnp.bfloat16))
    ref_bf = jax.lax.conv_general_dilated(
        x.astype(jnp.bfloat16), weight.astype(jnp.bfloat16),
        window_strides=(1, 1), padding=((1, 1), (1, 1)),
        dimension_numbers=("NCHW", "OIHW", "NCHW"),
        preferred_element_type=jnp.float32)
    np.testing.assert_allclose(np.asarray(out_bf), np.asarray(ref_bf),
                               rtol=5e-3, atol=5e-3)

    print("KERNEL_OK")
</pallas_src>

<mosaic_0001>
module attributes {stable_mosaic.version = 11 : i64} {
  func.func @_conv_rowblock_kernel(%arg0: i32, %arg1: i32, %arg2: memref<9x8x4xf32, #tpu.memory_space<vmem>>, %arg3: memref<1x4x18x18xf32, #tpu.memory_space<vmem>>, %arg4: memref<1x8x256xf32, #tpu.memory_space<vmem>>) attributes {dimension_semantics = [#tpu.dimension_semantics<parallel>, #tpu.dimension_semantics<parallel>], iteration_bounds = array<i64: 2, 1>, scalar_prefetch = 0 : i64, scratch_operands = 0 : i64, tpu.core_type = #tpu.core_type<tc>, window_params = [{pipeline_mode = #tpu.pipeline_mode<synchronous>, transform_indices = @transform_0, window_bounds = array<i64: 9, 8, 4>}, {transform_indices = @transform_1, window_bounds = array<i64: 1, 4, 18, 18>}, {transform_indices = @transform_2, window_bounds = array<i64: 1, 8, 256>}]} {
    %c16_i32 = arith.constant 16 : i32
    %0 = arith.muli %arg1, %c16_i32 : i32
    %1 = tpu.assume_multiple %0, 16 : i32
    %cst = arith.constant 0.000000e+00 : f32
    %2 = vector.broadcast %cst : f32 to vector<8x256xf32>
    %c0_i32 = arith.constant 0 : i32
    %3 = arith.addi %1, %c0_i32 : i32
    %c0 = arith.constant 0 : index
    %c0_0 = arith.constant 0 : index
    %4 = arith.index_cast %3 : i32 to index
    %c0_1 = arith.constant 0 : index
    %5 = vector.load %arg3[%c0, %c0_0, %4, %c0_1] : memref<1x4x18x18xf32, #tpu.memory_space<vmem>>, vector<1x4x16x16xf32>
    %6 = vector.shape_cast %5 : vector<1x4x16x16xf32> to vector<4x16x16xf32>
    %7 = vector.shape_cast %6 : vector<4x16x16xf32> to vector<4x256xf32>
    %c0_2 = arith.constant 0 : index
    %c0_3 = arith.constant 0 : index
    %c0_4 = arith.constant 0 : index
    %8 = vector.load %arg2[%c0_2, %c0_3, %c0_4] : memref<9x8x4xf32, #tpu.memory_space<vmem>>, vector<1x8x4xf32>
    %9 = vector.shape_cast %8 : vector<1x8x4xf32> to vector<8x4xf32>
    %cst_5 = arith.constant dense<0.000000e+00> : vector<8x256xf32>
    %10 = tpu.matmul %9, %7, %cst_5 {dimension_numbers = #tpu.dot_dimension_numbers<[1], [0], [0], [1], [0, 0, 1, 1], [], []>} : vector<8x4xf32>, vector<4x256xf32>, vector<8x256xf32> -> vector<8x256xf32>
    %11 = arith.addf %2, %10 : vector<8x256xf32>
    %c0_i32_6 = arith.constant 0 : i32
    %12 = arith.addi %1, %c0_i32_6 : i32
    %c0_7 = arith.constant 0 : index
    %c0_8 = arith.constant 0 : index
    %13 = arith.index_cast %12 : i32 to index
    %c1 = arith.constant 1 : index
    %14 = vector.load %arg3[%c0_7, %c0_8, %13, %c1] : memref<1x4x18x18xf32, #tpu.memory_space<vmem>>, vector<1x4x16x16xf32>
    %15 = vector.shape_cast %14 : vector<1x4x16x16xf32> to vector<4x16x16xf32>
    %16 = vector.shape_cast %15 : vector<4x16x16xf32> to vector<4x256xf32>
    %c1_9 = arith.constant 1 : index
    %c0_10 = arith.constant 0 : index
    %c0_11 = arith.constant 0 : index
    %17 = vector.load %arg2[%c1_9, %c0_10, %c0_11] : memref<9x8x4xf32, #tpu.memory_space<vmem>>, vector<1x8x4xf32>
    %18 = vector.shape_cast %17 : vector<1x8x4xf32> to vector<8x4xf32>
    %cst_12 = arith.constant dense<0.000000e+00> : vector<8x256xf32>
    %19 = tpu.matmul %18, %16, %cst_12 {dimension_numbers = #tpu.dot_dimension_numbers<[1], [0], [0], [1], [0, 0, 1, 1], [], []>} : vector<8x4xf32>, vector<4x256xf32>, vector<8x256xf32> -> vector<8x256xf32>
    %20 = arith.addf %11, %19 : vector<8x256xf32>
    %c0_i32_13 = arith.constant 0 : i32
    %21 = arith.addi %1, %c0_i32_13 : i32
    %c0_14 = arith.constant 0 : index
    %c0_15 = arith.constant 0 : index
    %22 = arith.index_cast %21 : i32 to index
    %c2 = arith.constant 2 : index
    %23 = vector.load %arg3[%c0_14, %c0_15, %22, %c2] : memref<1x4x18x18xf32, #tpu.memory_space<vmem>>, vector<1x4x16x16xf32>
    %24 = vector.shape_cast %23 : vector<1x4x16x16xf32> to vector<4x16x16xf32>
    %25 = vector.shape_cast %24 : vector<4x16x16xf32> to vector<4x256xf32>
    %c2_16 = arith.constant 2 : index
    %c0_17 = arith.constant 0 : index
    %c0_18 = arith.constant 0 : index
    %26 = vector.load %arg2[%c2_16, %c0_17, %c0_18] : memref<9x8x4xf32, #tpu.memory_space<vmem>>, vector<1x8x4xf32>
    %27 = vector.shape_cast %26 : vector<1x8x4xf32> to vector<8x4xf32>
    %cst_19 = arith.constant dense<0.000000e+00> : vector<8x256xf32>
    %28 = tpu.matmul %27, %25, %cst_19 {dimension_numbers = #tpu.dot_dimension_numbers<[1], [0], [0], [1], [0, 0, 1, 1], [], []>} : vector<8x4xf32>, vector<4x256xf32>, vector<8x256xf32> -> vector<8x256xf32>
    %29 = arith.addf %20, %28 : vector<8x256xf32>
    %c1_i32 = arith.constant 1 : i32
    %30 = arith.addi %1, %c1_i32 : i32
    %c0_20 = arith.constant 0 : index
    %c0_21 = arith.constant 0 : index
    %31 = arith.index_cast %30 : i32 to index
    %c0_22 = arith.constant 0 : index
    %32 = vector.load %arg3[%c0_20, %c0_21, %31, %c0_22] : memref<1x4x18x18xf32, #tpu.memory_space<vmem>>, vector<1x4x16x16xf32>
    %33 = vector.shape_cast %32 : vector<1x4x16x16xf32> to vector<4x16x16xf32>
    %34 = vector.shape_cast %33 : vector<4x16x16xf32> to vector<4x256xf32>
    %c3 = arith.constant 3 : index
    %c0_23 = arith.constant 0 : index
    %c0_24 = arith.constant 0 : index
    %35 = vector.load %arg2[%c3, %c0_23, %c0_24] : memref<9x8x4xf32, #tpu.memory_space<vmem>>, vector<1x8x4xf32>
    %36 = vector.shape_cast %35 : vector<1x8x4xf32> to vector<8x4xf32>
    %cst_25 = arith.constant dense<0.000000e+00> : vector<8x256xf32>
    %37 = tpu.matmul %36, %34, %cst_25 {dimension_numbers = #tpu.dot_dimension_numbers<[1], [0], [0], [1], [0, 0, 1, 1], [], []>} : vector<8x4xf32>, vector<4x256xf32>, vector<8x256xf32> -> vector<8x256xf32>
    %38 = arith.addf %29, %37 : vector<8x256xf32>
    %c1_i32_26 = arith.constant 1 : i32
    %39 = arith.addi %1, %c1_i32_26 : i32
    %c0_27 = arith.constant 0 : index
    %c0_28 = arith.constant 0 : index
    %40 = arith.index_cast %39 : i32 to index
    %c1_29 = arith.constant 1 : index
    %41 = vector.load %arg3[%c0_27, %c0_28, %40, %c1_29] : memref<1x4x18x18xf32, #tpu.memory_space<vmem>>, vector<1x4x16x16xf32>
    %42 = vector.shape_cast %41 : vector<1x4x16x16xf32> to vector<4x16x16xf32>
    %43 = vector.shape_cast %42 : vector<4x16x16xf32> to vector<4x256xf32>
    %c4 = arith.constant 4 : index
    %c0_30 = arith.constant 0 : index
    %c0_31 = arith.constant 0 : index
    %44 = vector.load %arg2[%c4, %c0_30, %c0_31] : memref<9x8x4xf32, #tpu.memory_space<vmem>>, vector<1x8x4xf32>
    %45 = vector.shape_cast %44 : vector<1x8x4xf32> to vector<8x4xf32>
    %cst_32 = arith.constant dense<0.000000e+00> : vector<8x256xf32>
    %46 = tpu.matmul %45, %43, %cst_32 {dimension_numbers = #tpu.dot_dimension_numbers<[1], [0], [0], [1], [0, 0, 1, 1], [], []>} : vector<8x4xf32>, vector<4x256xf32>, vector<8x256xf32> -> vector<8x256xf32>
    %47 = arith.addf %38, %46 : vector<8x256xf32>
    %c1_i32_33 = arith.constant 1 : i32
    %48 = arith.addi %1, %c1_i32_33 : i32
    %c0_34 = arith.constant 0 : index
    %c0_35 = arith.constant 0 : index
    %49 = arith.index_cast %48 : i32 to index
    %c2_36 = arith.constant 2 : index
    %50 = vector.load %arg3[%c0_34, %c0_35, %49, %c2_36] : memref<1x4x18x18xf32, #tpu.memory_space<vmem>>, vector<1x4x16x16xf32>
    %51 = vector.shape_cast %50 : vector<1x4x16x16xf32> to vector<4x16x16xf32>
    %52 = vector.shape_cast %51 : vector<4x16x16xf32> to vector<4x256xf32>
    %c5 = arith.constant 5 : index
    %c0_37 = arith.constant 0 : index
    %c0_38 = arith.constant 0 : index
    %53 = vector.load %arg2[%c5, %c0_37, %c0_38] : memref<9x8x4xf32, #tpu.memory_space<vmem>>, vector<1x8x4xf32>
    %54 = vector.shape_cast %53 : vector<1x8x4xf32> to vector<8x4xf32>
    %cst_39 = arith.constant dense<0.000000e+00> : vector<8x256xf32>
    %55 = tpu.matmul %54, %52, %cst_39 {dimension_numbers = #tpu.dot_dimension_numbers<[1], [0], [0], [1], [0, 0, 1, 1], [], []>} : vector<8x4xf32>, vector<4x256xf32>, vector<8x256xf32> -> vector<8x256xf32>
    %56 = arith.addf %47, %55 : vector<8x256xf32>
    %c2_i32 = arith.constant 2 : i32
    %57 = arith.addi %1, %c2_i32 : i32
    %c0_40 = arith.constant 0 : index
    %c0_41 = arith.constant 0 : index
    %58 = arith.index_cast %57 : i32 to index
    %c0_42 = arith.constant 0 : index
    %59 = vector.load %arg3[%c0_40, %c0_41, %58, %c0_42] : memref<1x4x18x18xf32, #tpu.memory_space<vmem>>, vector<1x4x16x16xf32>
    %60 = vector.shape_cast %59 : vector<1x4x16x16xf32> to vector<4x16x16xf32>
    %61 = vector.shape_cast %60 : vector<4x16x16xf32> to vector<4x256xf32>
    %c6 = arith.constant 6 : index
    %c0_43 = arith.constant 0 : index
    %c0_44 = arith.constant 0 : index
    %62 = vector.load %arg2[%c6, %c0_43, %c0_44] : memref<9x8x4xf32, #tpu.memory_space<vmem>>, vector<1x8x4xf32>
    %63 = vector.shape_cast %62 : vector<1x8x4xf32> to vector<8x4xf32>
    %cst_45 = arith.constant dense<0.000000e+00> : vector<8x256xf32>
    %64 = tpu.matmul %63, %61, %cst_45 {dimension_numbers = #tpu.dot_dimension_numbers<[1], [0], [0], [1], [0, 0, 1, 1], [], []>} : vector<8x4xf32>, vector<4x256xf32>, vector<8x256xf32> -> vector<8x256xf32>
    %65 = arith.addf %56, %64 : vector<8x256xf32>
    %c2_i32_46 = arith.constant 2 : i32
    %66 = arith.addi %1, %c2_i32_46 : i32
    %c0_47 = arith.constant 0 : index
    %c0_48 = arith.constant 0 : index
    %67 = arith.index_cast %66 : i32 to index
    %c1_49 = arith.constant 1 : index
    %68 = vector.load %arg3[%c0_47, %c0_48, %67, %c1_49] : memref<1x4x18x18xf32, #tpu.memory_space<vmem>>, vector<1x4x16x16xf32>
    %69 = vector.shape_cast %68 : vector<1x4x16x16xf32> to vector<4x16x16xf32>
    %70 = vector.shape_cast %69 : vector<4x16x16xf32> to vector<4x256xf32>
    %c7 = arith.constant 7 : index
    %c0_50 = arith.constant 0 : index
    %c0_51 = arith.constant 0 : index
    %71 = vector.load %arg2[%c7, %c0_50, %c0_51] : memref<9x8x4xf32, #tpu.memory_space<vmem>>, vector<1x8x4xf32>
    %72 = vector.shape_cast %71 : vector<1x8x4xf32> to vector<8x4xf32>
    %cst_52 = arith.constant dense<0.000000e+00> : vector<8x256xf32>
    %73 = tpu.matmul %72, %70, %cst_52 {dimension_numbers = #tpu.dot_dimension_numbers<[1], [0], [0], [1], [0, 0, 1, 1], [], []>} : vector<8x4xf32>, vector<4x256xf32>, vector<8x256xf32> -> vector<8x256xf32>
    %74 = arith.addf %65, %73 : vector<8x256xf32>
    %c2_i32_53 = arith.constant 2 : i32
    %75 = arith.addi %1, %c2_i32_53 : i32
    %c0_54 = arith.constant 0 : index
    %c0_55 = arith.constant 0 : index
    %76 = arith.index_cast %75 : i32 to index
    %c2_56 = arith.constant 2 : index
    %77 = vector.load %arg3[%c0_54, %c0_55, %76, %c2_56] : memref<1x4x18x18xf32, #tpu.memory_space<vmem>>, vector<1x4x16x16xf32>
    %78 = vector.shape_cast %77 : vector<1x4x16x16xf32> to vector<4x16x16xf32>
    %79 = vector.shape_cast %78 : vector<4x16x16xf32> to vector<4x256xf32>
    %c8 = arith.constant 8 : index
    %c0_57 = arith.constant 0 : index
    %c0_58 = arith.constant 0 : index
    %80 = vector.load %arg2[%c8, %c0_57, %c0_58] : memref<9x8x4xf32, #tpu.memory_space<vmem>>, vector<1x8x4xf32>
    %81 = vector.shape_cast %80 : vector<1x8x4xf32> to vector<8x4xf32>
    %cst_59 = arith.constant dense<0.000000e+00> : vector<8x256xf32>
    %82 = tpu.matmul %81, %79, %cst_59 {dimension_numbers = #tpu.dot_dimension_numbers<[1], [0], [0], [1], [0, 0, 1, 1], [], []>} : vector<8x4xf32>, vector<4x256xf32>, vector<8x256xf32> -> vector<8x256xf32>
    %83 = arith.addf %74, %82 : vector<8x256xf32>
    %c0_60 = arith.constant 0 : index
    %c0_61 = arith.constant 0 : index
    %c0_62 = arith.constant 0 : index
    %84 = vector.load %arg4[%c0_60, %c0_61, %c0_62] : memref<1x8x256xf32, #tpu.memory_space<vmem>>, vector<1x8x256xf32>
    %85 = vector.shape_cast %84 : vector<1x8x256xf32> to vector<8x256xf32>
    %86 = vector.shape_cast %83 : vector<8x256xf32> to vector<1x8x256xf32>
    tpu.vector_store %arg4[%c0_60, %c0_61, %c0_62], %86 {strides = array<i32>} : memref<1x8x256xf32, #tpu.memory_space<vmem>>, vector<1x8x256xf32>,
    return
  }
  func.func @transform_0(%arg0: i32, %arg1: i32) -> (i32, i32, i32) {
    %c0_i32 = arith.constant 0 : i32
    %c0_i32_0 = arith.constant 0 : i32
    %c0_i32_1 = arith.constant 0 : i32
    %c0_i32_2 = arith.constant 0 : i32
    return %c0_i32, %c0_i32_0, %c0_i32_1 : i32, i32, i32
  }
  func.func @transform_1(%arg0: i32, %arg1: i32) -> (i32, i32, i32, i32) {
    %c0_i32 = arith.constant 0 : i32
    %c0_i32_0 = arith.constant 0 : i32
    %c0_i32_1 = arith.constant 0 : i32
    %c0_i32_2 = arith.constant 0 : i32
    return %arg0, %c0_i32, %c0_i32_0, %c0_i32_1 : i32, i32, i32, i32
  }
  func.func @transform_2(%arg0: i32, %arg1: i32) -> (i32, i32, i32) {
    %c0_i32 = arith.constant 0 : i32
    %c0_i32_0 = arith.constant 0 : i32
    return %arg0, %c0_i32, %arg1 : i32, i32, i32
  }
}

</mosaic_0001>

<bundles_post_ra>
// kernel: tpu_custom_call.1
= control target key start
LH: loop header
LB: loop body
LE: loop exit
PB: predicated region body
PF: predicated region fallthrough
CT: control target
= control target key end

     0   :  { %7 = vsyncpa [#allocation3], 0  ;;  %s4846_s0 = inlined_call_operand.vmem [shape: f32[9,8,4], index: 0, kind: input, shape index: {}]   ;;  %s4847_s1 = inlined_call_operand.vmem [shape: f32[2,4,18,18], index: 1, kind: input, shape index: {}]   ;;  %s4848_s2 = inlined_call_operand.hbm [shape: f32[2,8,256], index: 2, kind: output, shape index: {}]  }
   0x1   :  { %9 = vsyncpa [#allocation3 + $0x1], 0  ;;  %s3424_s9 = smov 0   ;;  %s3426_s10 = smov 0  }
   0x2   :  { %s3428_s11 = smov 0   ;;  %s3430_s12 = smov 0  }
   0x3   :  { %s3432_s13 = smov 0   ;;  %s3434_s14 = smov 0  }
   0x4 LB: > { %s3130_s15 = sadd.s32 4294967295, %s3394_s14   ;;  %s3131_s16 = sadd.s32 4294967294, %s3394_s14   ;;  %s3394_s14 = sphi %s3434_s14, %s15_s14   ;;  %s3390_s13 = sphi %s3432_s13, %s4915_s13   ;;  %s3386_s12 = sphi %s3430_s12, %s4914_s12   ;;  %s3382_s11 = sphi %s3428_s11, %s4913_s11   ;;  %s3378_s10 = sphi %s3426_s10, %s4912_s10   ;;  %s3374_s9 = sphi %s3424_s9, %s4911_s9  }
   0x5   : > { %s27_s17 = sadd.s32 1, %s3390_s13  ;;  %s83_s18 = sadd.s32 1, %s3382_s11 }
   0x6   : > { %p29_p0 = scmp.ge.s32.totalorder %s27_s17, 2  ;;  %p93_p1 = scmp.ne.s32.totalorder %s3382_s11, %s3378_s10 }
   0x7   : > { %p94_p2 = scmp.eq.s32.totalorder %s3130_s15, 1  ;;  %p99_p3 = scmp.ne.s32.totalorder %s3378_s10, %s3374_s9 }
   0x8   : > { %s4917_s17 = smov (%p29_p0, %s27_s17), 0  ;;  %p100_p5 = scmp.eq.s32.totalorder %s3131_s16, 1 }
   0x9   : > { %p3464_p4 = por %p94_p2, %p93_p1  ;;  %s78_s20 = ssub.s32 %s3390_s13, %s4917_s17 }
   0xa   : > { %p3134_p6 = scmp.ge.s32.totalorder %s3394_s14, 1  ;;  %p81_p7 = scmp.eq.s32.totalorder %s78_s20, 0 }
   0xb   : > { %p3471_p8 = por %p100_p5, %p99_p3  ;;  %p129_p9 = scmp.lt.s32.totalorder %s3394_s14, 3 }
   0xc   : > { %s3477_s22 = scalar_select %p81_p7, %s3382_s11, %s83_s18  }
   0xd   : > { %p130_p10 = pnand %p3134_p6, %p129_p9 }
   0xf   : > { %133 = sbr.rel (%p130_p10) target bundleno = 723 (0x2d3), region = 28 }
  0x14   : > { %p151_p11 = scmp.lt.s32.totalorder %s3386_s12, 1  ;;  %v172_v0 = vlaneseq  ;;  %v3396_v1 = vmov 1983009808   ;;  %v4853_v4 = vmov 0.0   ;;  %s3398_s28 = smov 127   ;;  %vm359_vm0 = vcmask 130048  }
  0x15   : > { %v170_v2 = vunpack.c.l.s4 %v3396_v1  ;;  %696 = vmatprep.mubr.f32.mxu0 %v4853_v4  ;;  %776 = vmatprep.mubr.f32.mxu1 %v4853_v4  ;;  %s3399_s29 = smov 126   ;;  %s3401_s30 = smov 16   ;;  %vm361_vm1 = vcmask 261120   ;;  %vm363_vm2 = vcmask 392192   ;;  %vm365_vm3 = vcmask 523264  }
  0x16   : > { %s152_s23 = scalar_select %p151_p11, %s3386_s12, 1  ;;  %v3481_v3 = vshrl.u32 %v172_v0, 7  ;;  %vm367_vm4 = vcmask 654336   ;;  %vm369_vm5 = vcmask 785408   ;;  %vm371_vm6 = vcmask 916480  }
  0x17   : > { %v171_v5 = vunpack.c.0.s8 %v170_v2  ;;  %s3402_s3 = smov 32   ;;  %s3403_s4 = smov 48   ;;  %vm625_vm7 = vcmask 1043456   ;;  %vm621_vm8 = vcmask 31744  }
  0x18   : > { %s3226_s24 = smul.u32 96, %s152_s23  ;;  %s3404_s5 = smov 64  }
  0x19   : > { %v3491_v6 = vsub.s32 %v171_v5, %v3481_v3  ;;  %v3400_v5 = vmov 1934713408   ;;  %s3405_s6 = smov 96   ;;  %s3406_s7 = smov 80  }
  0x1a   : > { %s3488_s27 = scalar_lea.vmem %s4847_s1, %s3226_s24  ;;  %s3407_s8 = smov 112  }
  0x1b   : > { %v164_v7 = vld [vmem:[%s3488_s27 + $0x38] sm:$0xff]  ;;  %v160_v8 = vld [vmem:[%s3488_s27 + $0x8] sm:$0xff]  ;;  %v166_v11 = vld [vmem:[%s3488_s27 + $0x50] sm:$0xff]  ;;  %s148_s15 = sand.u32 1, %s3378_s10   ;;  %s3225_s18 = sshll.u32 %s3386_s12, 8 }
  0x1c   : > { %399 = vrot.lane.b32.xlu1 %v164_v7, %s3398_s28  ;;  %391 = vrot.lane.b32.xlu0 %v160_v8, %s3398_s28  ;;  %v235_v9 = vcombine.low %v160_v8, %v164_v7  ;;  %v236_v10 = vcombine.high %v160_v8, %v164_v7  ;;  %v162_v12 = vld [vmem:[%s3488_s27 + $0x20] sm:$0xff]  ;;  %v161_v15 = vld [vmem:[%s3488_s27 + $0x18] sm:$0xff]  ;;  %s3135_s16 = sshll.u32 %s148_s15, 4  ;;  %s3050_s26 = scalar_lea.hbm %s4848_s2, %s3225_s18 }
  0x1d   : > { %v251_v13 = vcombine.low %v162_v12, %v166_v11  ;;  %v252_v14 = vcombine.high %v162_v12, %v166_v11  ;;  %v165_v16 = vld [vmem:[%s3488_s27 + $0x48] sm:$0xff]  ;;  %v159_v19 = vld [vmem:[%s3488_s27] sm:$0xff]  ;;  %v163_v22 = vld [vmem:[%s3488_s27 + $0x30] sm:$0xff]  ;;  %s150_s20 = scalar_lea.vmem [#allocation2], %s3135_s16  ;;  %s3408_s12 = smov [#allocation2]  }
  0x1e   : > { %v3502_v17 = vrot.slane %v235_v9, %v3491_v6  ;;  %v3505_v18 = vrot.slane %v236_v10, %v3491_v6  ;;  %v183_v20 = vcombine.low %v161_v15, %v165_v16  ;;  %v184_v21 = vcombine.high %v161_v15, %v165_v16  ;;  %v3163_v37 = vld [vmem:[%s3488_s27 + $0x21] sm:$0xff]  ;;  %v3161_v38 = vld [vmem:[%s3488_s27 + $0x9] sm:$0xff]  ;;  %v3167_v39 = vld [vmem:[%s3488_s27 + $0x51] sm:$0xff]  ;;  %s3052_s23 = sshll.u32 %s150_s20, 4  ;;  %s3053_s23 = int_to_ptr.vmem [resolvable:$true] %s3052_s23 }
  0x1f   : > { %v3510_v23 = vrot.slane %v251_v13, %v3491_v6  ;;  %v3513_v24 = vrot.slane %v252_v14, %v3491_v6  ;;  %v167_v25 = vcombine.low %v159_v19, %v163_v22  ;;  %v168_v26 = vcombine.high %v159_v19, %v163_v22  ;;  %v3165_v40 = vld [vmem:[%s3488_s27 + $0x39] sm:$0xff]  ;;  %v3160_v47 = vld [vmem:[%s3488_s27 + $0x1] sm:$0xff]  ;;  %v3166_v48 = vld [vmem:[%s3488_s27 + $0x49] sm:$0xff] }
  0x20   : > { %403 = vrot.lane.b32.xlu1 %v166_v11, %s3398_s28  ;;  %395 = vrot.lane.b32.xlu0 %v162_v12, %s3398_s28  ;;  %v3518_v27 = vrot.slane %v183_v20, %v3491_v6  ;;  %v3542_v34 = vrot.slane %v184_v21, %v3491_v6  ;;  %v1191_v41 = vcombine.low %v3161_v38, %v3165_v40  ;;  %v3162_v46 = vld [vmem:[%s3488_s27 + $0x19] sm:$0xff]  ;;  %v3164_v49 = vld [vmem:[%s3488_s27 + $0x31] sm:$0xff] }
  0x21   : > { %v3521_v28 = vrot.slane %v167_v25, %v3491_v6  ;;  %v267_v29 = vcombine.low %v3502_v17, %v3510_v23  ;;  %v268_v30 = vcombine.high %v3502_v17, %v3510_v23  ;;  %v283_v31 = vcombine.low %v3505_v18, %v3513_v24  ;;  %v3600_v58 = vld [vmem:[%s3488_s27 + $0x22] sm:$0xff]  ;;  %v3603_v59 = vld [vmem:[%s3488_s27 + $0xa] sm:$0xff]  ;;  %v3612_v61 = vld [vmem:[%s3488_s27 + $0x52] sm:$0xff] }
  0x22   : > { %v3545_v35 = vrot.slane %v168_v26, %v3491_v6  ;;  %v1207_v42 = vcombine.low %v3163_v37, %v3167_v39  ;;  %v3560_v43 = vrot.slane %v1191_v41, %v3491_v6  ;;  %v284_v50 = vcombine.high %v3505_v18, %v3513_v24  ;;  %v3615_v62 = vld [vmem:[%s3488_s27 + $0x3a] sm:$0xff]  ;;  %v3625_v0 = vld [vmem:[%s3488_s27 + $0x2] sm:$0xff]  ;;  %v3632_v1 = vld [vmem:[%s3488_s27 + $0x4a] sm:$0xff] }
  0x23   : > { %v199_v32 = vcombine.low %v3521_v28, %v3518_v27  ;;  %v200_v33 = vcombine.high %v3521_v28, %v3518_v27  ;;  %v1123_v51 = vcombine.low %v3160_v47, %v3164_v49  ;;  %v1139_v52 = vcombine.low %v3162_v46, %v3166_v48  ;;  %v3622_v63 = vld [vmem:[%s3488_s27 + $0x1a] sm:$0xff]  ;;  %v3635_v2 = vld [vmem:[%s3488_s27 + $0x32] sm:$0xff]  ;;  %s3036_s27 = scalar_lea.sflag [#allocation3], %s148_s15 }
  0x24   : > { %393 = vrot.lane.b32.xlu1 %v161_v15, %s3398_s28  ;;  %389 = vrot.lane.b32.xlu0 %v159_v19, %s3398_s28  ;;  %v215_v36 = vcombine.low %v3545_v35, %v3542_v34  ;;  %v3563_v44 = vrot.slane %v1207_v42, %v3491_v6  ;;  %v1208_v9 = vcombine.high %v3163_v37, %v3167_v39 }
  0x25   : > { %v3580_v53 = vrot.slane %v1123_v51, %v3491_v6  ;;  %v3583_v54 = vrot.slane %v1139_v52, %v3491_v6  ;;  %v1124_v14 = vcombine.high %v3160_v47, %v3164_v49 }
  0x26   : > { %v1223_v45 = vcombine.low %v3560_v43, %v3563_v44 }
  0x27   : > { %v1155_v55 = vcombine.low %v3580_v53, %v3583_v54 }
  0x28   : > { %401 = vrot.lane.b32.xlu1 %v165_v16, %s3398_s28  ;;  %397 = vrot.lane.b32.xlu0 %v163_v22, %s3398_s28 }
  0x2c   : > { %805 = vrot.lane.b32.xlu1 %v162_v12, %s3399_s29  ;;  %801 = vrot.lane.b32.xlu0 %v160_v8, %s3399_s29  ;;  %v1192_v8 = vcombine.high %v3161_v38, %v3165_v40 }
  0x2e   : > { %v3642_v10 = vrot.slane %v1192_v8, %v3491_v6 }
  0x30   : > { %813 = vrot.lane.b32.xlu1 %v166_v11, %s3399_s29  ;;  %809 = vrot.lane.b32.xlu0 %v164_v7, %s3399_s29  ;;  %v202_v7 = vunpack.c.l.s4 %v3400_v5  ;;  %v3645_v11 = vrot.slane %v1208_v9, %v3491_v6 }
  0x32   : > { %v203_v12 = vunpack.c.0.s8 %v202_v7 }
  0x34   : > { %803 = vrot.lane.b32.xlu1 %v161_v15, %s3399_s29  ;;  %799 = vrot.lane.b32.xlu0 %v159_v19, %s3399_s29  ;;  %v1140_v15 = vcombine.high %v3162_v46, %v3166_v48  ;;  %v3661_v19 = vrot.slane %v1124_v14, %v3491_v6 }
  0x36   : > { %v3664_v20 = vrot.slane %v1140_v15, %v3491_v6 }
  0x38   : > { %811 = vrot.lane.b32.xlu1 %v165_v16, %s3399_s29  ;;  %807 = vrot.lane.b32.xlu0 %v163_v22, %s3399_s29  ;;  %v3658_v16 = vsub.s32 %v203_v12, %v3481_v3 }
  0x3a   : > { %v3676_v3 = vrot.slane %v267_v29, %v3658_v16  ;;  %v3682_v22 = vrot.slane %v199_v32, %v3658_v16  ;;  %v282_v29 = vrot.slane %v268_v30, %v3658_v16  ;;  %v214_v32 = vrot.slane %v200_v33, %v3658_v16 }
  0x3b   : > { %v3709_v17 = vrot.slane %v283_v31, %v3658_v16  ;;  %v3881_v18 = vrot.slane %v1155_v55, %v3658_v16 }
  0x3c   : > { %1435 = vrot.lane.b32.xlu1 %v3163_v37, %s3398_s28  ;;  %1431 = vrot.lane.b32.xlu0 %v3161_v38, %s3398_s28  ;;  %4867 = vst [vmem:[#allocation5_spill] sm:$0xff] %v3682_v22  ;;  %v299_v25 = vcombine.high %v3676_v3, %v4853_v4  ;;  %v231_v26 = vcombine.high %v3682_v22, %v4853_v4 }
  0x3d   : > { %v232_v23 = vcombine.high %v214_v32, %v4853_v4  ;;  %4871 = vst [vmem:[#allocation9_spill] sm:$0xff] %v3881_v18 }
  0x40   : > { %1443 = vrot.lane.b32.xlu1 %v3167_v39, %s3398_s28  ;;  %1439 = vrot.lane.b32.xlu0 %v3165_v40, %s3398_s28 }
  0x44   : > { %1433 = vrot.lane.b32.xlu1 %v3162_v46, %s3398_s28  ;;  %1429 = vrot.lane.b32.xlu0 %v3160_v47, %s3398_s28 }
  0x48   : > { %1441 = vrot.lane.b32.xlu1 %v3166_v48, %s3398_s28  ;;  %1437 = vrot.lane.b32.xlu0 %v3164_v49, %s3398_s28 }
  0x4c   : > { %1765 = vrot.lane.b32.xlu1 %v3163_v37, %s3399_s29  ;;  %1761 = vrot.lane.b32.xlu0 %v3161_v38, %s3399_s29  ;;  %v300_v37 = vcombine.high %v282_v29, %v4853_v4 }
  0x50   : > { %1773 = vrot.lane.b32.xlu1 %v3167_v39, %s3399_s29  ;;  %1769 = vrot.lane.b32.xlu0 %v3165_v40, %s3399_s29 }
  0x54   : > { %1763 = vrot.lane.b32.xlu1 %v3162_v46, %s3399_s29  ;;  %1759 = vrot.lane.b32.xlu0 %v3160_v47, %s3399_s29 }
  0x58   : > { %1771 = vrot.lane.b32.xlu1 %v3166_v48, %s3399_s29  ;;  %1767 = vrot.lane.b32.xlu0 %v3164_v49, %s3399_s29 }
  0x5c   : > { %2395 = vrot.lane.b32.xlu1 %v3600_v58, %s3398_s28  ;;  %2391 = vrot.lane.b32.xlu0 %v3603_v59, %s3398_s28 }
  0x60   : > { %2403 = vrot.lane.b32.xlu1 %v3612_v61, %s3398_s28  ;;  %2399 = vrot.lane.b32.xlu0 %v3615_v62, %s3398_s28 }
  0x64   : > { %2393 = vrot.lane.b32.xlu1 %v3622_v63, %s3398_s28  ;;  %2389 = vrot.lane.b32.xlu0 %v3625_v0, %s3398_s28 }
  0x68   : > { %2401 = vrot.lane.b32.xlu1 %v3632_v1, %s3398_s28  ;;  %2397 = vrot.lane.b32.xlu0 %v3635_v2, %s3398_s28  ;;  %s3318_s28 = scalar_lea.vmem %s3053_s23, 256 }
  0x69   : > { %p3319_p12 = scmp.ne.s32.totalorder %s3053_s23, %s3318_s28 }
  0x6b   : > { %p3320_p13 = pnand %p3319_p12, %p3464_p4 }
  0x6c   : > { %2725 = vrot.lane.b32.xlu1 %v3600_v58, %s3399_s29  ;;  %2721 = vrot.lane.b32.xlu0 %v3603_v59, %s3399_s29 }
  0x6d   : > { %p3321_p0 = pneg %p3320_p13 }
  0x70   : > { %2733 = vrot.lane.b32.xlu1 %v3612_v61, %s3399_s29  ;;  %2729 = vrot.lane.b32.xlu0 %v3615_v62, %s3399_s29 }
  0x74   : > { %2723 = vrot.lane.b32.xlu1 %v3622_v63, %s3399_s29  ;;  %2719 = vrot.lane.b32.xlu0 %v3625_v0, %s3399_s29 }
  0x78   : > { %2731 = vrot.lane.b32.xlu1 %v3632_v1, %s3399_s29  ;;  %2727 = vrot.lane.b32.xlu0 %v3635_v2, %s3399_s29  ;;  %s3322_s29 = sshll.u32 %s3408_s12, 4  ;;  %s3323_s29 = int_to_ptr.vmem [resolvable:$false] %s3322_s29 }
  0x79   : > { %p3325_p1 = scmp.lt.s32.totalorder %s3053_s23, %s3323_s29 }
  0x7c   : > { %332 = vrot.lane.b32.xlu1 %v299_v25, %s3401_s30  ;;  %304 = vrot.lane.b32.xlu0 %v231_v26, %s3401_s30 }
  0x80   : > { %336 = vrot.lane.b32.xlu1 %v282_v29, %s3402_s3  ;;  %308 = vrot.lane.b32.xlu0 %v214_v32, %s3402_s3 }
  0x84   : > { %340 = vrot.lane.b32.xlu1 %v300_v37, %s3403_s4  ;;  %344 = vrot.lane.b32.xlu0 %v3709_v17, %s3404_s5 }
  0x88   : > { %312 = vrot.lane.b32.xlu1 %v232_v23, %s3403_s4 }
  0x8e   : > { %v400_v30 = vpop.permute.xlu1 %399  ;;  %v392_v31 = vpop.permute.xlu0 %391 }
  0x8f   : > { %v481_v33 = vcombine.low %v392_v31, %v400_v30  ;;  %v482_v38 = vcombine.high %v392_v31, %v400_v30 }
  0x91   : > { %v489_v46 = vrot.slane %v481_v33, %v3491_v6  ;;  %v496_v47 = vrot.slane %v482_v38, %v3491_v6 }
  0x92   : > { %v404_v39 = vpop.permute.xlu1 %403  ;;  %v396_v40 = vpop.permute.xlu0 %395 }
  0x93   : > { %v497_v41 = vcombine.low %v396_v40, %v404_v39  ;;  %v498_v42 = vcombine.high %v396_v40, %v404_v39 }
  0x95   : > { %v505_v48 = vrot.slane %v497_v41, %v3491_v6  ;;  %v512_v49 = vrot.slane %v498_v42, %v3491_v6 }
  0x96   : > { %v394_v51 = vpop.permute.xlu1 %393  ;;  %v390_v52 = vpop.permute.xlu0 %389 }
  0x97   : > { %v529_v5 = vcombine.low %v496_v47, %v512_v49  ;;  %v514_v7 = vcombine.high %v489_v46, %v505_v48 }
  0x99   : > { %v537_v8 = vrot.slane %v529_v5, %v3658_v16  ;;  %v528_v9 = vrot.slane %v514_v7, %v3658_v16  ;;  %v513_v5 = vcombine.low %v489_v46, %v505_v48 }
  0x9a   : > { %v402_v12 = vpop.permute.xlu1 %401  ;;  %v398_v14 = vpop.permute.xlu0 %397 }
  0x9b   : > { %v429_v15 = vcombine.low %v394_v51, %v402_v12  ;;  %v430_v25 = vcombine.high %v394_v51, %v402_v12  ;;  %v413_v26 = vcombine.low %v390_v52, %v398_v14  ;;  %v414_v29 = vcombine.high %v390_v52, %v398_v14  ;;  %590 = vrot.lane.b32.xlu1 %v537_v8, %s3404_s5 }
  0x9c   : > { %582 = vrot.lane.b32.xlu0 %v528_v9, %s3402_s3  ;;  %v546_v46 = vcombine.high %v528_v9, %v4853_v4 }
  0x9d   : > { %v437_v32 = vrot.slane %v429_v15, %v3491_v6  ;;  %v3730_v37 = vrot.slane %v430_v25, %v3491_v6  ;;  %v421_v23 = vrot.slane %v413_v26, %v3491_v6  ;;  %v3734_v30 = vrot.slane %v414_v29, %v3491_v6 }
  0x9e   : > { %v3736_v31 = vpop.permute.xlu1 %805  ;;  %v3738_v33 = vpop.permute.xlu0 %801  ;;  %v530_v25 = vcombine.high %v496_v47, %v512_v49 }
  0x9f   : > { %v445_v38 = vcombine.low %v421_v23, %v437_v32  ;;  %v446_v39 = vcombine.high %v421_v23, %v437_v32  ;;  %v461_v42 = vcombine.low %v3734_v30, %v3730_v37 }
  0xa0   : > { %v544_v23 = vrot.slane %v530_v25, %v3658_v16 }
  0xa1   : > { %v460_v40 = vrot.slane %v446_v39, %v3658_v16  ;;  %v3742_v41 = vrot.slane %v445_v38, %v3658_v16  ;;  %v469_v15 = vrot.slane %v461_v42, %v3658_v16  ;;  %v3769_v38 = vrot.slane %v513_v5, %v3658_v16 }
  0xa2   : > { %v3746_v51 = vpop.permute.xlu1 %813  ;;  %v3748_v52 = vpop.permute.xlu0 %809  ;;  %v547_v42 = vcombine.high %v537_v8, %v4853_v4 }
  0xa3   : > { %554 = vrot.lane.b32.xlu0 %v460_v40, %s3402_s3  ;;  %v477_v7 = vcombine.high %v3742_v41, %v4853_v4  ;;  %v907_v12 = vcombine.low %v3736_v31, %v3746_v51  ;;  %v891_v14 = vcombine.low %v3738_v33, %v3748_v52  ;;  %v479_v8 = vcombine.high %v469_v15, %v4853_v4 }
  0xa4   : > { %v478_v27 = vcombine.high %v460_v40, %v4853_v4 }
  0xa5   : > { %550 = vrot.lane.b32.xlu1 %v477_v7, %s3401_s30  ;;  %v915_v48 = vrot.slane %v907_v12, %v3491_v6  ;;  %v899_v32 = vrot.slane %v891_v14, %v3491_v6  ;;  %v545_v14 = vcombine.high %v3769_v38, %v4853_v4 }
  0xa6   : > { %v3759_v26 = vpop.permute.xlu1 %803  ;;  %v3761_v29 = vpop.permute.xlu0 %799 }
  0xa7   : > { %562 = vrot.lane.b32.xlu0 %v469_v15, %s3404_s5  ;;  %v923_v7 = vcombine.low %v899_v32, %v915_v48  ;;  %v924_v15 = vcombine.high %v899_v32, %v915_v48 }
  0xa9   : > { %586 = vrot.lane.b32.xlu1 %v546_v46, %s3403_s4  ;;  %v938_v13 = vrot.slane %v924_v15, %v3658_v16 }
  0xaa   : > { %v3772_v47 = vpop.permute.xlu1 %811  ;;  %v3774_v49 = vpop.permute.xlu0 %807 }
  0xab   : > { %v839_v39 = vcombine.low %v3759_v26, %v3772_v47  ;;  %v823_v9 = vcombine.low %v3761_v29, %v3774_v49  ;;  %598 = vrot.lane.b32.xlu0 %v544_v23, %s3405_s6 }
  0xad   : > { %v847_v5 = vrot.slane %v839_v39, %v3491_v6  ;;  %v831_v12 = vrot.slane %v823_v9, %v3491_v6  ;;  %594 = vrot.lane.b32.xlu1 %v547_v42, %s3406_s7  ;;  %v3798_v9 = vrot.slane %v923_v7, %v3658_v16 }
  0xae   : > { %v3787_v25 = vpop.permute.xlu1 %1435  ;;  %v3789_v46 = vpop.permute.xlu0 %1431 }
  0xaf   : > { %v855_v28 = vcombine.low %v831_v12, %v847_v5  ;;  %578 = vrot.lane.b32.xlu0 %v545_v14, %s3401_s30  ;;  %4869 = vst [vmem:[#allocation7_spill] sm:$0xff] %v3798_v9  ;;  %v955_v40 = vcombine.high %v3798_v9, %v4853_v4  ;;  %v856_v60 = vcombine.high %v831_v12, %v847_v5 }
  0xb1   : > { %v3795_v39 = vrot.slane %v855_v28, %v3658_v16  ;;  %566 = vrot.lane.b32.xlu1 %v479_v8, %s3406_s7  ;;  %v223_v28 = vrot.slane %v215_v36, %v3658_v16  ;;  %v301_v36 = vcombine.high %v3709_v17, %v4853_v4  ;;  %v870_v15 = vrot.slane %v856_v60, %v3658_v16 }
  0xb2   : > { %v3801_v42 = vpop.permute.xlu1 %1443  ;;  %v3803_v21 = vpop.permute.xlu0 %1439  ;;  %v548_v17 = vcombine.high %v544_v23, %v4853_v4  ;;  %v892_v60 = vcombine.high %v3738_v33, %v3748_v52  ;;  %v956_v23 = vcombine.high %v938_v13, %v4853_v4  ;;  %v840_v33 = vcombine.high %v3759_v26, %v3772_v47 }
  0xb3   : > { %4868 = vst [vmem:[#allocation6_spill] sm:$0xff] %v3795_v39  ;;  %558 = vrot.lane.b32.xlu0 %v478_v27, %s3403_s4  ;;  %v887_v14 = vcombine.high %v3795_v39, %v4853_v4  ;;  %v462_v27 = vcombine.high %v3734_v30, %v3730_v37  ;;  %v3837_v37 = vrot.slane %v1223_v45, %v3658_v16 }
  0xb4   : > { %v908_v45 = vcombine.high %v3736_v31, %v3746_v51  ;;  %v233_v31 = vcombine.high %v223_v28, %v4853_v4  ;;  %v824_v52 = vcombine.high %v3761_v29, %v3774_v49  ;;  %v3905_v29 = vrot.slane %v840_v33, %v3491_v6 }
  0xb5   : > { %960 = vrot.lane.b32.xlu1 %v887_v14, %s3401_s30  ;;  %v476_v14 = vrot.slane %v462_v27, %v3658_v16  ;;  %4870 = vst [vmem:[#allocation8_spill] sm:$0xff] %v3837_v37  ;;  %v1255_v5 = vcombine.high %v3837_v37, %v4853_v4  ;;  %v1537_v49 = vcombine.low %v3787_v25, %v3801_v42 }
  0xb6   : > { %v3815_v7 = vpop.permute.xlu1 %1433  ;;  %v3817_v8 = vpop.permute.xlu0 %1429  ;;  %v3871_v51 = vrot.slane %v908_v45, %v3491_v6  ;;  %v3908_v47 = vrot.slane %v824_v52, %v3491_v6 }
  0xb7   : > { %988 = vrot.lane.b32.xlu0 %v955_v40, %s3401_s30  ;;  %v1545_v52 = vrot.slane %v1537_v49, %v3491_v6 }
  0xb9   : > { %316 = vrot.lane.b32.xlu1 %v223_v28, %s3404_s5  ;;  %v888_v28 = vcombine.high %v870_v15, %v4853_v4 }
  0xba   : > { %v3824_v48 = vpop.permute.xlu1 %1441  ;;  %v3826_v32 = vpop.permute.xlu0 %1437 }
  0xbb   : > { %992 = vrot.lane.b32.xlu0 %v938_v13, %s3402_s3  ;;  %v3874_v13 = vrot.slane %v892_v60, %v3491_v6  ;;  %v4872_v60 = vcombine.high %v3545_v35, %v3542_v34 }
  0xbd   : > { %570 = vrot.lane.b32.xlu1 %v476_v14, %s3405_s6  ;;  %v939_v55 = vcombine.low %v3874_v13, %v3871_v51 }
  0xbe   : > { %v3839_v30 = vpop.permute.xlu1 %1765  ;;  %v3841_v40 = vpop.permute.xlu0 %1761 }
  0xbf   : > { %348 = vrot.lane.b32.xlu0 %v301_v36, %s3406_s7  ;;  %v298_v36 = vrot.slane %v284_v50, %v3658_v16 }
  0xc1   : > { %964 = vrot.lane.b32.xlu1 %v870_v15, %s3402_s3  ;;  %v947_v15 = vrot.slane %v939_v55, %v3658_v16  ;;  %v302_v34 = vcombine.high %v298_v36, %v4853_v4 }
  0xc2   : > { %v3849_v12 = vpop.permute.xlu1 %1773  ;;  %v3851_v27 = vpop.permute.xlu0 %1769 }
  0xc3   : > { %602 = vrot.lane.b32.xlu0 %v548_v17, %s3407_s8  ;;  %v480_v17 = vcombine.high %v476_v14, %v4853_v4  ;;  %v1521_v14 = vcombine.low %v3789_v46, %v3803_v21 }
  0xc5   : > { %1288 = vrot.lane.b32.xlu1 %v1255_v5, %s3401_s30  ;;  %v1187_v5 = vcombine.high %v3881_v18, %v4853_v4  ;;  %v957_v18 = vcombine.high %v947_v15, %v4853_v4 }
  0xc6   : > { %v3864_v57 = vpop.permute.xlu1 %1763  ;;  %v3866_v56 = vpop.permute.xlu0 %1759 }
  0xc7   : > { %996 = vrot.lane.b32.xlu0 %v956_v23, %s3403_s4  ;;  %v230_v23 = vrot.slane %v4872_v60, %v3658_v16 }
  0xc9   : > { %352 = vrot.lane.b32.xlu1 %v298_v36, %s3405_s6  ;;  %v1453_v36 = vcombine.low %v3817_v8, %v3826_v32 }
  0xca   : > { %v3883_v24 = vpop.permute.xlu1 %1771  ;;  %v3885_v50 = vpop.permute.xlu0 %1767 }
  0xcb   : > { %320 = vrot.lane.b32.xlu0 %v233_v31, %s3406_s7  ;;  %v4873_v31 = vcombine.high %v3560_v43, %v3563_v44  ;;  %v4874_v44 = vcombine.high %v3580_v53, %v3583_v54  ;;  %v1799_v9 = vcombine.low %v3864_v57, %v3883_v24 }
  0xcd   : > { %968 = vrot.lane.b32.xlu1 %v888_v28, %s3403_s4  ;;  %v1238_v33 = vrot.slane %v4873_v31, %v3658_v16  ;;  %v1529_v28 = vrot.slane %v1521_v14, %v3491_v6  ;;  %v1170_v49 = vrot.slane %v4874_v44, %v3658_v16  ;;  %v1469_v31 = vcombine.low %v3815_v7, %v3824_v48 }
  0xce   : > { %v3899_v45 = vpop.permute.xlu1 %2395  ;;  %v3902_v26 = vpop.permute.xlu0 %2391 }
  0xcf   : > { %574 = vrot.lane.b32.xlu0 %v480_v17, %s3407_s8  ;;  %v871_v17 = vcombine.low %v3908_v47, %v3905_v29  ;;  %v1553_v35 = vcombine.low %v1529_v28, %v1545_v52  ;;  %v1256_v53 = vcombine.high %v1238_v33, %v4853_v4  ;;  %v1477_v54 = vrot.slane %v1469_v31, %v3491_v6 }
  0xd0   : > { %v1188_v31 = vcombine.high %v1170_v49, %v4853_v4 }
  0xd1   : > { %1260 = vrot.lane.b32.xlu1 %v1187_v5, %s3401_s30  ;;  %v879_v43 = vrot.slane %v871_v17, %v3658_v16  ;;  %v3952_v17 = vrot.slane %v1553_v35, %v3658_v16  ;;  %v940_v35 = vcombine.high %v3874_v13, %v3871_v51  ;;  %v4877_v51 = vcombine.low %v3642_v10, %v3645_v11 }
  0xd2   : > { %v3929_v55 = vpop.permute.xlu1 %2403  ;;  %v3931_v5 = vpop.permute.xlu0 %2399 }
  0xd3   : > { %1000 = vrot.lane.b32.xlu0 %v947_v15, %s3404_s5  ;;  %4875 = vst [vmem:[#allocation10_spill] sm:$0xff] %v3952_v17  ;;  %v1585_v44 = vcombine.high %v3952_v17, %v4853_v4  ;;  %v234_v15 = vcombine.high %v230_v23, %v4853_v4  ;;  %v1247_v13 = vrot.slane %v4877_v51, %v3658_v16 }
  0xd5   : > { %324 = vrot.lane.b32.xlu1 %v230_v23, %s3405_s6  ;;  %v954_v23 = vrot.slane %v940_v35, %v3658_v16 }
  0xd6   : > { %v3942_v14 = vpop.permute.xlu1 %2393  ;;  %v3945_v60 = vpop.permute.xlu0 %2389 }
  0xd7   : > { %1292 = vrot.lane.b32.xlu0 %v1238_v33, %s3402_s3  ;;  %v889_v33 = vcombine.high %v879_v43, %v4853_v4 }
  0xd9   : > { %972 = vrot.lane.b32.xlu1 %v879_v43, %s3404_s5  ;;  %v1867_v43 = vcombine.low %v3839_v30, %v3849_v12 }
  0xda   : > { %v3962_v37 = vpop.permute.xlu1 %2401  ;;  %v3964_v39 = vpop.permute.xlu0 %2397 }
  0xdb   : > { %356 = vrot.lane.b32.xlu0 %v302_v34, %s3407_s8  ;;  %v1461_v34 = vrot.slane %v1453_v36, %v3491_v6 }
  0xdd   : > { %1264 = vrot.lane.b32.xlu1 %v1170_v49, %s3402_s3  ;;  %v1851_v49 = vcombine.low %v3841_v40, %v3851_v27 }
  0xde   : > { %v3974_v36 = vpop.permute.xlu1 %2725  ;;  %v3977_v17 = vpop.permute.xlu0 %2721 }
  0xdf   : > { %1004 = vrot.lane.b32.xlu0 %v957_v18, %s3406_s7  ;;  %v1485_v18 = vcombine.low %v1461_v34, %v1477_v54  ;;  %v4007_v51 = vrot.slane %v1851_v49, %v3491_v6 }
  0xe1   : > { %1618 = vrot.lane.b32.xlu1 %v1585_v44, %s3401_s30 }
  0xe2   : > { %v3999_v35 = vpop.permute.xlu0 %2729 }
  0xe3   : > { %1296 = vrot.lane.b32.xlu0 %v1256_v53, %s3403_s4  ;;  %v3980_v53 = vrot.slane %v1485_v18, %v3658_v16  ;;  %v872_v18 = vcombine.high %v3908_v47, %v3905_v29  ;;  %v4879_v47 = vcombine.low %v3661_v19, %v3664_v20 }
  0xe5   : > { %976 = vrot.lane.b32.xlu1 %v889_v33, %s3406_s7  ;;  %4876 = vst [vmem:[#allocation11_spill] sm:$0xff] %v3980_v53  ;;  %v1517_v44 = vcombine.high %v3980_v53, %v4853_v4  ;;  %v1554_v33 = vcombine.high %v1529_v28, %v1545_v52  ;;  %v886_v4 = vrot.slane %v872_v18, %v3658_v16 }
  0xe6   : > { %v1179_v52 = vrot.slane %v4879_v47, %v3658_v16  ;;  %v4019_v28 = vpop.permute.xlu0 %2719  ;;  %v1783_v47 = vcombine.low %v3866_v56, %v3885_v50 }
  0xe7   : > { %328 = vrot.lane.b32.xlu0 %v234_v15, %s3407_s8  ;;  %v3995_v15 = vpop.permute.xlu1 %2733  ;;  %v1568_v53 = vrot.slane %v1554_v33, %v3658_v16  ;;  %4880 = vst [vmem:[#allocation13_spill] sm:$0xff] %v4019_v28 }
  0xe9   : > { %1268 = vrot.lane.b32.xlu1 %v1188_v31, %s3403_s4  ;;  %v4004_v31 = vrot.slane %v1867_v43, %v3491_v6  ;;  %v1486_v43 = vcombine.high %v1461_v34, %v1477_v54 }
  0xeb   : > { %1008 = vrot.lane.b32.xlu0 %v954_v23, %s3405_s6  ;;  %v4012_v29 = vpop.permute.xlu1 %2723  ;;  %v1883_v49 = vcombine.low %v4007_v51, %v4004_v31  ;;  %v1500_v54 = vrot.slane %v1486_v43, %v3658_v16  ;;  %v1522_v43 = vcombine.high %v3789_v46, %v3803_v21  ;;  %v4885_v46 = vcombine.high %v3642_v10, %v3645_v11 }
  0xec   : > { %4878 = vst [vmem:[#allocation12_spill] sm:$0xff] %v4012_v29  ;;  %v1538_v29 = vcombine.high %v3787_v25, %v3801_v42  ;;  %v2151_v10 = vcombine.low %v3603_v59, %v3615_v62  ;;  %v2167_v11 = vcombine.low %v3600_v58, %v3612_v61 }
  0xed   : > { %1590 = vrot.lane.b32.xlu1 %v1517_v44, %s3401_s30  ;;  %v4881_v44 = vmov 0.0   ;;  %v4035_v34 = vrot.slane %v1883_v49, %v3658_v16  ;;  %v4061_v25 = vrot.slane %v1522_v43, %v3491_v6  ;;  %v1254_v42 = vrot.slane %v4885_v46, %v3658_v16 }
  0xee   : > { %v958_v18 = vcombine.high %v954_v23, %v4881_v44  ;;  %v1257_v33 = vcombine.high %v1247_v13, %v4881_v44  ;;  %v4037_v23 = vpop.permute.xlu0 %2727  ;;  %v1586_v49 = vcombine.high %v1568_v53, %v4881_v44  ;;  %v890_v21 = vcombine.high %v886_v4, %v4881_v44 }
  0xef   : > { %1300 = vrot.lane.b32.xlu0 %v1247_v13, %s3404_s5  ;;  %v4031_v22 = vpop.permute.xlu1 %2731  ;;  %4882 = vst [vmem:[#allocation14_spill] sm:$0xff] %v4035_v34  ;;  %4883 = vst [vmem:[#allocation15_spill] sm:$0xff] %v4037_v23  ;;  %v1807_v13 = vrot.slane %v1799_v9, %v3491_v6  ;;  %v1915_v28 = vcombine.high %v4035_v34, %v4881_v44  ;;  %v4058_v34 = vrot.slane %v1538_v29, %v3491_v6 }
  0xf0   : > { %v1454_v29 = vcombine.high %v3817_v8, %v3826_v32  ;;  %v1884_v32 = vcombine.high %v4007_v51, %v4004_v31  ;;  %v4109_v46 = vrot.slane %v2151_v10, %v3491_v6 }
  0xf1   : > { %980 = vrot.lane.b32.xlu1 %v886_v4, %s3405_s6  ;;  %v1569_v43 = vcombine.low %v4061_v25, %v4058_v34 }
  0xf2   : > { %v4055_v9 = vpop.permute.xlu0 %304  ;;  %v4094_v8 = vrot.slane %v1454_v29, %v3491_v6  ;;  %v1898_v51 = vrot.slane %v1884_v32, %v3658_v16  ;;  %v2083_v32 = vcombine.low %v3625_v0, %v3635_v2 }
  0xf3   : > { %1622 = vrot.lane.b32.xlu0 %v1568_v53, %s3402_s3  ;;  %v4050_v23 = vpop.permute.xlu1 %332  ;;  %4884 = vst [vmem:[#allocation16_spill] sm:$0xff] %v4055_v9  ;;  %v1470_v53 = vcombine.high %v3815_v7, %v3824_v48 }
  0xf5   : > { %1272 = vrot.lane.b32.xlu1 %v1179_v52, %s3404_s5  ;;  %v4091_v7 = vrot.slane %v1470_v53, %v3491_v6  ;;  %v4112_v53 = vrot.slane %v2167_v11, %v3491_v6 }
  0xf7   : > { %1012 = vrot.lane.b32.xlu0 %v958_v18, %s3407_s8  ;;  %v1791_v18 = vrot.slane %v1783_v47, %v3491_v6  ;;  %v1501_v31 = vcombine.low %v4094_v8, %v4091_v7 }
  0xf9   : > { %1594 = vrot.lane.b32.xlu1 %v1500_v54, %s3402_s3  ;;  %v1815_v47 = vcombine.low %v1791_v18, %v1807_v13  ;;  %v1509_v10 = vrot.slane %v1501_v31, %v3658_v16 }
  0xfb   : > { %1304 = vrot.lane.b32.xlu0 %v1257_v33, %s3406_s7  ;;  %v1189_v33 = vcombine.high %v1179_v52, %v4881_v44  ;;  %v4074_v52 = vpop.permute.xlu1 %336  ;;  %v4078_v4 = vrot.slane %v1815_v47, %v3658_v16  ;;  %v4888_v47 = vcombine.high %v3661_v19, %v3664_v20  ;;  %v2183_v19 = vcombine.low %v4109_v46, %v4112_v53 }
  0xfc   : > { %v1258_v20 = vcombine.high %v1254_v42, %v4881_v44  ;;  %v1519_v9 = vcombine.high %v1509_v10, %v4881_v44 }
  0xfd   : > { %1948 = vrot.lane.b32.xlu1 %v1915_v28, %s3401_s30  ;;  %v1518_v28 = vcombine.high %v1500_v54, %v4881_v44  ;;  %4886 = vst [vmem:[#allocation17_spill] sm:$0xff] %v4078_v4  ;;  %v1847_v48 = vcombine.high %v4078_v4, %v4881_v44  ;;  %v1577_v54 = vrot.slane %v1569_v43, %v3658_v16 }
  0xfe   : > { %v4149_v4 = vrot.slane %v2083_v32, %v3491_v6 }
  0xff   : > { %1626 = vrot.lane.b32.xlu0 %v1586_v49, %s3403_s4  ;;  %v4082_v49 = vpop.permute.xlu0 %308  ;;  %v1587_v31 = vcombine.high %v1577_v54, %v4881_v44 }
 0x100   : > { %4887 = vst [vmem:[#allocation18_spill] sm:$0xff] %v4082_v49 }
 0x101   : > { %1276 = vrot.lane.b32.xlu1 %v1189_v33, %s3406_s7  ;;  %v4101_v33 = vpop.permute.xlu1 %340 }
 0x103   : > { %984 = vrot.lane.b32.xlu0 %v890_v21, %s3407_s8  ;;  %v1186_v21 = vrot.slane %v4888_v47, %v3658_v16  ;;  %v4114_v29 = vpop.permute.xlu0 %344  ;;  %v2099_v47 = vcombine.low %v3622_v63, %v3632_v1 }
 0x105   : > { %1598 = vrot.lane.b32.xlu1 %v1518_v28, %s3403_s4  ;;  %v1816_v28 = vcombine.high %v1791_v18, %v1807_v13  ;;  %v4125_v43 = vpop.permute.xlu1 %312 }
 0x106   : > { %4889 = vst [vmem:[#allocation19_spill] sm:$0xff] %v4125_v43  ;;  %v4152_v43 = vrot.slane %v2099_v47, %v3491_v6  ;;  %v1190_v47 = vcombine.high %v1186_v21, %v4881_v44 }
 0x107   : > { %1308 = vrot.lane.b32.xlu0 %v1254_v42, %s3405_s6  ;;  %v1830_v18 = vrot.slane %v1816_v28, %v3658_v16  ;;  %v1868_v28 = vcombine.high %v3839_v30, %v3849_v12  ;;  %v1570_v30 = vcombine.high %v4061_v25, %v4058_v34  ;;  %v1784_v34 = vcombine.high %v3866_v56, %v3885_v50 }
 0x108   : > { %v2115_v32 = vcombine.low %v4149_v4, %v4152_v43  ;;  %v2184_v56 = vcombine.high %v4109_v46, %v4112_v53 }
 0x109   : > { %1920 = vrot.lane.b32.xlu1 %v1847_v48, %s3401_s30  ;;  %v4132_v48 = vrot.slane %v2183_v19, %v3658_v16  ;;  %v4205_v50 = vrot.slane %v1784_v34, %v3491_v6 }
 0x10a   : > { %v2198_v53 = vrot.slane %v2184_v56, %v3658_v16 }
 0x10b   : > { %1630 = vrot.lane.b32.xlu0 %v1577_v54, %s3404_s5  ;;  %4890 = vst [vmem:[#allocation20_spill] sm:$0xff] %v4132_v48  ;;  %v2215_v19 = vcombine.high %v4132_v48, %v4881_v44  ;;  %v1852_v54 = vcombine.high %v3841_v40, %v3851_v27  ;;  %v1916_v48 = vcombine.high %v1898_v51, %v4881_v44 }
 0x10c   : > { %v4173_v40 = vrot.slane %v1868_v28, %v3491_v6 }
 0x10d   : > { %1280 = vrot.lane.b32.xlu1 %v1186_v21, %s3405_s6  ;;  %v4139_v13 = vpop.permute.xlu1 %590  ;;  %v4176_v12 = vrot.slane %v1852_v54, %v3491_v6  ;;  %v1800_v21 = vcombine.high %v3864_v57, %v3883_v24  ;;  %v1502_v57 = vcombine.high %v4094_v8, %v4091_v7  ;;  %v2481_v54 = vcombine.low %v3902_v26, %v3931_v5 }
 0x10e   : > { %v4128_v11 = vpop.permute.xlu0 %582 }
 0x10f   : > { %1952 = vrot.lane.b32.xlu0 %v1898_v51, %s3402_s3  ;;  %v4182_v51 = vrot.slane %v2115_v32, %v3658_v16  ;;  %v4202_v24 = vrot.slane %v1800_v21, %v3491_v6  ;;  %v4227_v21 = vrot.slane %v2481_v54, %v3491_v6 }
 0x111   : > { %1602 = vrot.lane.b32.xlu1 %v1509_v10, %s3404_s5  ;;  %4891 = vst [vmem:[#allocation21_spill] sm:$0xff] %v4182_v51  ;;  %v1848_v10 = vcombine.high %v1830_v18, %v4881_v44  ;;  %v2147_v28 = vcombine.high %v4182_v51, %v4881_v44 }
 0x113   : > { %1312 = vrot.lane.b32.xlu0 %v1258_v20, %s3407_s8 }
 0x115   : > { %v4142_v42 = vpop.permute.xlu0 %554  ;;  %1924 = vrot.lane.b32.xlu1 %v1830_v18, %s3402_s3  ;;  %v2497_v18 = vcombine.low %v3899_v45, %v3929_v55 }
 0x117   : > { %1634 = vrot.lane.b32.xlu0 %v1587_v31, %s3406_s7  ;;  %v4155_v20 = vpop.permute.xlu1 %550 }
 0x119   : > { %v4161_v49 = vpop.permute.xlu0 %562  ;;  %2248 = vrot.lane.b32.xlu1 %v2215_v19, %s3401_s30 }
 0x11b   : > { %1956 = vrot.lane.b32.xlu0 %v1916_v48, %s3403_s4  ;;  %v587_v31 = vpop.permute.xlu1 %586  ;;  %v1899_v48 = vcombine.low %v4176_v12, %v4173_v40 }
 0x11d   : > { %v4178_v27 = vpop.permute.xlu0 %598  ;;  %1606 = vrot.lane.b32.xlu1 %v1519_v9, %s3406_s7  ;;  %v1584_v9 = vrot.slane %v1570_v30, %v3658_v16  ;;  %v1907_v8 = vrot.slane %v1899_v48, %v3658_v16  ;;  %v4224_v30 = vrot.slane %v2497_v18, %v3491_v6 }
 0x11f   : > { %1284 = vrot.lane.b32.xlu0 %v1190_v47, %s3407_s8  ;;  %v595_v25 = vpop.permute.xlu1 %594  ;;  %v1831_v47 = vcombine.low %v4205_v50, %v4202_v24  ;;  %v1588_v54 = vcombine.high %v1584_v9, %v4881_v44 }
 0x121   : > { %v579_v19 = vpop.permute.xlu0 %578  ;;  %1928 = vrot.lane.b32.xlu1 %v1848_v10, %s3403_s4 }
 0x122   : > { %v612_v46 = vsel %vm359_vm0, %v3769_v38, %v579_v19  ;;  %v1516_v38 = vrot.slane %v1502_v57, %v3658_v16  ;;  %v2116_v19 = vcombine.high %v4149_v4, %v4152_v43  ;;  %v1839_v57 = vrot.slane %v1831_v47, %v3658_v16 }
 0x123   : > { %1638 = vrot.lane.b32.xlu0 %v1584_v9, %s3405_s6  ;;  %v4211_v32 = vpop.permute.xlu1 %566  ;;  %v613_v10 = vsel %vm361_vm1, %v612_v46, %v4128_v11  ;;  %v2413_v46 = vcombine.low %v3945_v60, %v3964_v39 }
 0x124   : > { %v614_v56 = vsel %vm363_vm2, %v613_v10, %v587_v31  ;;  %v2130_v4 = vrot.slane %v2116_v19, %v3658_v16  ;;  %v2429_v31 = vcombine.low %v3942_v14, %v3962_v37  ;;  %v1917_v19 = vcombine.high %v1907_v8, %v4881_v44 }
 0x125   : > { %v4213_v7 = vpop.permute.xlu0 %558  ;;  %2220 = vrot.lane.b32.xlu1 %v2147_v28, %s3401_s30  ;;  %v2513_v28 = vcombine.low %v4227_v21, %v4224_v30  ;;  %v615_v43 = vsel %vm365_vm3, %v614_v56, %v4139_v13  ;;  %v2216_v13 = vcombine.high %v2198_v53, %v4881_v44  ;;  %v2152_v56 = vcombine.high %v3603_v59, %v3615_v62 }
 0x126   : > { %v4273_v51 = vrot.slane %v2429_v31, %v3491_v6 }
 0x127   : > { %1960 = vrot.lane.b32.xlu0 %v1907_v8, %s3404_s5  ;;  %v4229_v34 = vpop.permute.xlu1 %960  ;;  %v4259_v9 = vrot.slane %v2513_v28, %v3658_v16  ;;  %v2168_v28 = vcombine.high %v3600_v58, %v3612_v61  ;;  %v4276_v8 = vrot.slane %v2413_v46, %v3491_v6  ;;  %v605_v58 = vsel %vm359_vm0, %v3742_v41, %v4155_v20 }
 0x128   : > { %4892 = vst [vmem:[#allocation22_spill] sm:$0xff] %v4229_v34  ;;  %v4292_v61 = vrot.slane %v2152_v56, %v3491_v6  ;;  %v1849_v41 = vcombine.high %v1839_v57, %v4881_v44  ;;  %v1900_v20 = vcombine.high %v4176_v12, %v4173_v40  ;;  %v606_v46 = vsel %vm361_vm1, %v605_v58, %v4142_v42 }
 0x129   : > { %v4234_v48 = vpop.permute.xlu0 %988  ;;  %1610 = vrot.lane.b32.xlu1 %v1516_v38, %s3405_s6  ;;  %v4295_v62 = vrot.slane %v2168_v28, %v3491_v6  ;;  %v2148_v56 = vcombine.high %v2130_v4, %v4881_v44  ;;  %v2100_v40 = vcombine.high %v3622_v63, %v3632_v1  ;;  %v1832_v1 = vcombine.high %v4205_v50, %v4202_v24 }
 0x12a   : > { %v2514_v24 = vcombine.high %v4227_v21, %v4224_v30 }
 0x12b   : > { %2252 = vrot.lane.b32.xlu0 %v2198_v53, %s3402_s3  ;;  %v4243_v18 = vpop.permute.xlu1 %316  ;;  %v2199_v42 = vcombine.low %v4292_v61, %v4295_v62 }
 0x12d   : > { %v4246_v11 = vpop.permute.xlu0 %992  ;;  %1932 = vrot.lane.b32.xlu1 %v1839_v57, %s3404_s5  ;;  %v2084_v57 = vcombine.high %v3625_v0, %v3635_v2  ;;  %v4333_v0 = vrot.slane %v2100_v40, %v3491_v6  ;;  %v2207_v2 = vrot.slane %v2199_v42, %v3658_v16 }
 0x12f   : > { %1642 = vrot.lane.b32.xlu0 %v1588_v54, %s3407_s8  ;;  %v571_v47 = vpop.permute.xlu1 %570  ;;  %v616_v54 = vsel %vm367_vm4, %v615_v43, %v595_v25  ;;  %v2545_v25 = vcombine.high %v4259_v9, %v4881_v44  ;;  %v4330_v63 = vrot.slane %v2084_v57, %v3491_v6 }
 0x130   : > { %v617_v43 = vsel %vm369_vm5, %v616_v54, %v4178_v27  ;;  %v2445_v27 = vcombine.low %v4276_v8, %v4273_v51  ;;  %v1520_v54 = vcombine.high %v1516_v38, %v4881_v44 }
 0x131   : > { %v4261_v10 = vpop.permute.xlu0 %348  ;;  %2224 = vrot.lane.b32.xlu1 %v2130_v4, %s3402_s3  ;;  %v1914_v4 = vrot.slane %v1900_v20, %v3658_v16  ;;  %v2131_v20 = vcombine.low %v4330_v63, %v4333_v0 }
 0x132   : > { %v4321_v38 = vrot.slane %v2445_v27, %v3658_v16  ;;  %v3137_v27 = vld [vmem:[%s4846_s0 + $0x8] sm:$0xff] }
 0x133   : > { %1964 = vrot.lane.b32.xlu0 %v1917_v19, %s3406_s7  ;;  %v4278_v34 = vpop.permute.xlu1 %964 }
 0x134   : > { %v2477_v58 = vcombine.high %v4321_v38, %v4881_v44 }
 0x135   : > { %v603_v53 = vpop.permute.xlu0 %602  ;;  %2578 = vrot.lane.b32.xlu1 %v2545_v25, %s3401_s30  ;;  %v2811_v25 = vcombine.low %v3977_v17, %v3999_v35 }
 0x136   : > { %v618_v59 = vsel %vm371_vm6, %v617_v43, %v603_v53 }
 0x137   : > { %2256 = vrot.lane.b32.xlu0 %v2216_v13, %s3403_s4  ;;  %3138 = vmatprep.subr.msk.mxu0 %vm625_vm7, %v618_v59  ;;  %v4299_v31 = vpop.permute.xlu1 %1288  ;;  %v607_v13 = vsel %vm363_vm2, %v606_v46, %v4213_v7  ;;  %v4368_v21 = vrot.slane %v2811_v25, %v3491_v6 }
 0x138   : > { %v608_v7 = vsel %vm365_vm3, %v607_v13, %v4161_v49  ;;  %v2827_v49 = vcombine.low %v3974_v36, %v3995_v15  ;;  %v2139_v13 = vrot.slane %v2131_v20, %v3658_v16 }
 0x139   : > { %v4306_v19 = vpop.permute.xlu0 %996  ;;  %1936 = vrot.lane.b32.xlu1 %v1849_v41, %s3406_s7  ;;  %v609_v53 = vsel %vm367_vm4, %v608_v7, %v4211_v32  ;;  %v373_v32 = vsel %vm359_vm0, %v3676_v3, %v4050_v23  ;;  %v1846_v3 = vrot.slane %v1832_v1, %v3658_v16  ;;  %v1918_v7 = vcombine.high %v1914_v4, %v4881_v44 }
 0x13a   : > { %v610_v50 = vsel %vm369_vm5, %v609_v53, %v571_v47  ;;  %v4365_v30 = vrot.slane %v2827_v49, %v3491_v6  ;;  %v374_v23 = vsel %vm361_vm1, %v373_v32, %v4074_v52  ;;  %v4893_v49 = vld [vmem:[#allocation12_spill] sm:$0xff]  ;;  %v4895_v53 = vld [vmem:[#allocation13_spill] sm:$0xff] }
 0x13b   : > { %1614 = vrot.lane.b32.xlu0 %v1520_v54, %s3407_s8  ;;  %v353_v12 = vpop.permute.xlu1 %352  ;;  %v2528_v54 = vrot.slane %v2514_v24, %v3658_v16  ;;  %v375_v52 = vsel %vm363_vm2, %v374_v23, %v4101_v33  ;;  %v2759_v25 = vcombine.low %v4893_v49, %v4031_v22  ;;  %v4894_v33 = vld [vmem:[#allocation15_spill] sm:$0xff]  ;;  %v4896_v32 = vld [vmem:[#allocation16_spill] sm:$0xff] }
 0x13c   : > { %v2843_v57 = vcombine.low %v4368_v21, %v4365_v30  ;;  %v376_v1 = vsel %vm365_vm3, %v375_v52, %v4114_v29 }
 0x13d   : > { %v4325_v28 = vpop.permute.xlu0 %320  ;;  %2228 = vrot.lane.b32.xlu1 %v2148_v56, %s3403_s4  ;;  %v2446_v56 = vcombine.high %v4276_v8, %v4273_v51  ;;  %v2217_v8 = vcombine.high %v2207_v2, %v4881_v44 }
 0x13f   : > { %1968 = vrot.lane.b32.xlu0 %v1914_v4, %s3405_s6  ;;  %v4345_v43 = vpop.permute.xlu1 %968  ;;  %v2460_v51 = vrot.slane %v2446_v56, %v3658_v16  ;;  %v377_v4 = vsel %vm367_vm4, %v376_v1, %v4261_v10  ;;  %v2498_v56 = vcombine.high %v3899_v45, %v3929_v55  ;;  %v2149_v1 = vcombine.high %v2139_v13, %v4881_v44 }
 0x140   : > { %v378_v29 = vsel %vm369_vm5, %v377_v4, %v353_v12  ;;  %v4899_v4 = vld [vmem:[#allocation19_spill] sm:$0xff] }
 0x141   : > { %v575_v59 = vpop.permute.xlu0 %574  ;;  %2550 = vrot.lane.b32.xlu1 %v2477_v58, %s3401_s30  ;;  %v2743_v58 = vcombine.low %v4895_v53, %v4894_v33  ;;  %v4446_v55 = vrot.slane %v2498_v56, %v3491_v6 }
 0x142   : > { %v611_v41 = vsel %vm371_vm6, %v610_v50, %v575_v59  ;;  %v4407_v50 = vrot.slane %v2843_v57, %v3658_v16  ;;  %v2482_v57 = vcombine.high %v3902_v26, %v3931_v5 }
 0x143   : > { %2260 = vrot.lane.b32.xlu0 %v2207_v2, %s3404_s5  ;;  %3139 = vmatpush1.msk.msra.mxu0 %vm625_vm7, %v611_v41  ;;  %v4370_v47 = vpop.permute.xlu1 %1260  ;;  %v4418_v10 = vrot.slane %v2743_v58, %v3491_v6  ;;  %v4897_v41 = vld [vmem:[#allocation5_spill] sm:$0xff]  ;;  %v2200_v58 = vcombine.high %v4292_v61, %v4295_v62  ;;  %v2430_v61 = vcombine.high %v3942_v14, %v3962_v37 }
 0x144   : > { %3140 = vmatmul.mubr.msk.f32.vlgmr.msra.gmra.mxu0 %vm621_vm8, %v3137_v27  ;;  %v4415_v27 = vrot.slane %v2759_v25, %v3491_v6  ;;  %v360_v20 = vsel %vm359_vm0, %v4897_v41, %v4896_v32  ;;  %v2875_v23 = vcombine.high %v4407_v50, %v4881_v44  ;;  %v4449_v5 = vrot.slane %v2482_v57, %v3491_v6 }
 0x145   : > { %v4376_v46 = vpop.permute.xlu0 %1000  ;;  %1104 = vmatprep.mubr.f32.mxu0 %v4881_v44  ;;  %1940 = vrot.lane.b32.xlu1 %v1846_v3, %s3405_s6  ;;  %v2478_v41 = vcombine.high %v2460_v51, %v4881_v44 }
 0x146   : > { %v2775_v45 = vcombine.low %v4418_v10, %v4415_v27  ;;  %v2529_v37 = vcombine.low %v4449_v5, %v4446_v55 }
 0x147   : > { %2582 = vrot.lane.b32.xlu0 %v2528_v54, %s3402_s3  ;;  %v325_v40 = vpop.permute.xlu1 %324 }
 0x148   : > { %v2537_v57 = vrot.slane %v2529_v37, %v3658_v16 }
 0x149   : > { %v4389_v42 = vpop.permute.xlu0 %1292  ;;  %2232 = vrot.lane.b32.xlu1 %v2139_v13, %s3404_s5  ;;  %v1850_v13 = vcombine.high %v1846_v3, %v4881_v44 }
 0x14b   : > { %1972 = vrot.lane.b32.xlu0 %v1918_v7, %s3407_s8  ;;  %v4404_v24 = vpop.permute.xlu1 %972  ;;  %v2546_v7 = vcombine.high %v2528_v54, %v4881_v44 }
 0x14d   : > { %v357_v59 = vpop.permute.xlu0 %356  ;;  %2554 = vrot.lane.b32.xlu1 %v2460_v51, %s3402_s3  ;;  %v4486_v51 = vrot.slane %v2430_v61, %v3491_v6 }
 0x14e   : > { %v379_v2 = vsel %vm371_vm6, %v378_v29, %v357_v59  ;;  %v2214_v59 = vrot.slane %v2200_v58, %v3658_v16  ;;  %v2776_v58 = vcombine.high %v4418_v10, %v4415_v27  ;;  %v2812_v10 = vcombine.high %v3977_v17, %v3999_v35 }
 0x14f   : > { %2264 = vrot.lane.b32.xlu0 %v2217_v8, %s3406_s7  ;;  %3141 = vmatprep.subr.msk.mxu1 %vm625_vm7, %v379_v2  ;;  %v4423_v12 = vpop.permute.xlu1 %1264  ;;  %v4898_v8 = vld [vmem:[#allocation18_spill] sm:$0xff]  ;;  %v2414_v2 = vcombine.high %v3945_v60, %v3964_v39  ;;  %v380_v39 = vld [vmem:[%s4846_s0] sm:$0xff]  ;;  %v2530_v17 = vcombine.high %v4449_v5, %v4446_v55 }
 0x150   : > { %v362_v25 = vsel %vm361_vm1, %v360_v20, %v4898_v8  ;;  %v4471_v20 = vrot.slane %v2775_v45, %v3658_v16  ;;  %v4900_v45 = vld [vmem:[#allocation7_spill] sm:$0xff]  ;;  %v4551_v35 = vrot.slane %v2812_v10, %v3491_v6 }
 0x151   : > { %v4431_v52 = vpop.permute.xlu0 %1004  ;;  %2908 = vrot.lane.b32.xlu1 %v2875_v23, %s3401_s30  ;;  %v364_v29 = vsel %vm363_vm2, %v362_v25, %v4899_v4  ;;  %v2544_v55 = vrot.slane %v2530_v17, %v3658_v16 }
 0x152   : > { %v366_v62 = vsel %vm365_vm3, %v364_v29, %v4243_v18  ;;  %v2807_v56 = vcombine.high %v4471_v20, %v4881_v44 }
 0x153   : > { %2586 = vrot.lane.b32.xlu0 %v2546_v7, %s3403_s4  ;;  %v4443_v26 = vpop.permute.xlu1 %1618  ;;  %v368_v3 = vsel %vm367_vm4, %v366_v62, %v4325_v28  ;;  %v2132_v28 = vcombine.high %v4330_v63, %v4333_v0  ;;  %v2844_v63 = vcombine.high %v4368_v21, %v4365_v30  ;;  %v2218_v21 = vcombine.high %v2214_v59, %v4881_v44 }
 0x154   : > { %v370_v14 = vsel %vm369_vm5, %v368_v3, %v325_v40  ;;  %v4489_v40 = vrot.slane %v2414_v2, %v3491_v6 }
 0x155   : > { %v4451_v54 = vpop.permute.xlu0 %1296  ;;  %2236 = vrot.lane.b32.xlu1 %v2149_v1, %s3406_s7  ;;  %v2146_v7 = vrot.slane %v2132_v28, %v3658_v16  ;;  %v2858_v30 = vrot.slane %v2844_v63, %v3658_v16  ;;  %v4901_v28 = vld [vmem:[#allocation22_spill] sm:$0xff] }
 0x156   : > { %v2461_v1 = vcombine.low %v4489_v40, %v4486_v51 }
 0x157   : > { %1944 = vrot.lane.b32.xlu0 %v1850_v13, %s3407_s8  ;;  %v4467_v32 = vpop.permute.xlu1 %976  ;;  %v1022_v13 = vsel %vm359_vm0, %v4900_v45, %v4234_v48  ;;  %v2828_v48 = vcombine.high %v3974_v36, %v3995_v15  ;;  %v2150_v36 = vcombine.high %v2146_v7, %v4881_v44 }
 0x158   : > { %v2469_v29 = vrot.slane %v2461_v1, %v3658_v16  ;;  %v1023_v61 = vsel %vm361_vm1, %v1022_v13, %v4246_v11  ;;  %v3144_v13 = vld [vmem:[%s4846_s0 + $0x10] sm:$0xff] }
 0x159   : > { %v329_v18 = vpop.permute.xlu0 %328  ;;  %2558 = vrot.lane.b32.xlu1 %v2478_v41, %s3403_s4  ;;  %v1024_v2 = vsel %vm363_vm2, %v1023_v61, %v4306_v19  ;;  %v2790_v19 = vrot.slane %v2776_v58, %v3658_v16  ;;  %v4548_v15 = vrot.slane %v2828_v48, %v3491_v6 }
 0x15a   : > { %v372_v60 = vsel %vm371_vm6, %v370_v14, %v329_v18  ;;  %v1025_v27 = vsel %vm365_vm3, %v1024_v2, %v4376_v46  ;;  %v2547_v46 = vcombine.high %v2537_v57, %v4881_v44  ;;  %v2876_v18 = vcombine.high %v2858_v30, %v4881_v44 }
 0x15b   : > { %2268 = vrot.lane.b32.xlu0 %v2214_v59, %s3405_s6  ;;  %3142 = vmatpush1.msk.msra.mxu1 %vm625_vm7, %v372_v60  ;;  %v4491_v23 = vpop.permute.xlu1 %1268  ;;  %v1026_v11 = vsel %vm367_vm4, %v1025_v27, %v4431_v52  ;;  %v2859_v5 = vcombine.low %v4551_v35, %v4548_v15  ;;  %v2744_v60 = vcombine.high %v4895_v53, %v4894_v33 }
 0x15c   : > { %3143 = vmatmul.mubr.msk.f32.vlgmr.msra.gmra.mxu1 %vm621_vm8, %v380_v39  ;;  %v2760_v39 = vcombine.high %v4893_v49, %v4031_v22  ;;  %v2479_v1 = vcombine.high %v2469_v29, %v4881_v44 }
 0x15d   : > { %v1009_v0 = vpop.permute.xlu0 %1008  ;;  %1404 = vmatprep.mubr.f32.mxu1 %v4881_v44  ;;  %2880 = vrot.lane.b32.xlu1 %v2807_v56, %s3401_s30  ;;  %v4902_v56 = vld [vmem:[#allocation6_spill] sm:$0xff]  ;;  %v2758_v33 = vrot.slane %v2744_v60, %v3491_v6  ;;  %s3324_s30 = scalar_lea.vmem %s3323_s29, 512 }
 0x15e   : > { %v1027_v3 = vsel %vm369_vm5, %v1026_v11, %v1009_v0  ;;  %v1015_v63 = vsel %vm359_vm0, %v4902_v56, %v4901_v28  ;;  %v2774_v49 = vrot.slane %v2760_v39, %v3491_v6  ;;  %v4903_v11 = vld [vmem:[#allocation8_spill] sm:$0xff]  ;;  %p3326_p2 = scmp.lt.s32.totalorder %s3324_s30, %s3318_s28 }
 0x15f   : > { %2590 = vrot.lane.b32.xlu0 %v2537_v57, %s3404_s5  ;;  %v4505_v8 = vpop.permute.xlu1 %1590  ;;  %v1016_v57 = vsel %vm361_vm1, %v1015_v63, %v4278_v34 }
 0x160   : > { %v2792_v10 = vcombine.high %v2758_v33, %v2774_v49  ;;  %p3327_p3 = por %p3326_p2, %p3325_p1 }
 0x161   : > { %v4507_v25 = vpop.permute.xlu0 %1300  ;;  %2240 = vrot.lane.b32.xlu1 %v2146_v7, %s3405_s6 }
 0x162   : > { %p3328_p5 = pnand %p3327_p3, %p3321_p0 }
 0x163   : > { %2912 = vrot.lane.b32.xlu0 %v2858_v30, %s3402_s3  ;;  %v981_v4 = vpop.permute.xlu1 %980  ;;  %v1017_v30 = vsel %vm363_vm2, %v1016_v57, %v4345_v43  ;;  %v2462_v43 = vcombine.high %v4489_v40, %v4486_v51  ;;  %v2548_v51 = vcombine.high %v2544_v55, %v4881_v44 }
 0x164   : > { %v1018_v22 = vsel %vm365_vm3, %v1017_v30, %v4404_v24  ;;  %v2808_v24 = vcombine.high %v2790_v19, %v4881_v44 }
 0x165   : > { %v4521_v62 = vpop.permute.xlu0 %1622  ;;  %2562 = vrot.lane.b32.xlu1 %v2469_v29, %s3404_s5  ;;  %v1019_v34 = vsel %vm367_vm4, %v1018_v22, %v4467_v32  ;;  %v2791_v32 = vcombine.low %v2758_v33, %v2774_v49 }
 0x166   : > { %v1020_v58 = vsel %vm369_vm5, %v1019_v34, %v981_v4  ;;  %v2476_v4 = vrot.slane %v2462_v43, %v3658_v16 }
 0x167   : > { %2272 = vrot.lane.b32.xlu0 %v2218_v21, %s3407_s8  ;;  %v4535_v59 = vpop.permute.xlu1 %1272  ;;  %v2867_v21 = vrot.slane %v2859_v5, %v3658_v16  ;;  %v2799_v27 = vrot.slane %v2791_v32, %v3658_v16 }
 0x168   : > { %v2480_v17 = vcombine.high %v2476_v4, %v4881_v44 }
 0x169   : > { %v1013_v41 = vpop.permute.xlu0 %1012  ;;  %2884 = vrot.lane.b32.xlu1 %v2790_v19, %s3402_s3  ;;  %v2877_v2 = vcombine.high %v2867_v21, %v4881_v44  ;;  %v1322_v19 = vsel %vm359_vm0, %v4903_v11, %v4299_v31  ;;  %v4906_v11 = vld [vmem:[#allocation11_spill] sm:$0xff] }
 0x16a   : > { %v1028_v37 = vsel %vm371_vm6, %v1027_v3, %v1013_v41  ;;  %v2809_v41 = vcombine.high %v2799_v27, %v4881_v44 }
 0x16b   : > { %2594 = vrot.lane.b32.xlu0 %v2547_v46, %s3406_s7  ;;  %3145 = vmatprep.subr.msk.mxu0 %vm625_vm7, %v1028_v37  ;;  %v4553_v52 = vpop.permute.xlu1 %1594  ;;  %v2860_v46 = vcombine.high %v4551_v35, %v4548_v15  ;;  %v1323_v37 = vsel %vm361_vm1, %v1322_v19, %v4389_v42  ;;  %v2806_v35 = vrot.slane %v2792_v10, %v3658_v16 }
 0x16c   : > { %v1645_v19 = vsel %vm359_vm0, %v4906_v11, %v4505_v8  ;;  %v3168_v8 = vld [vmem:[%s4846_s0 + $0x20] sm:$0xff] }
 0x16d   : > { %v1305_v14 = vpop.permute.xlu0 %1304  ;;  %2244 = vrot.lane.b32.xlu1 %v2150_v36, %s3407_s8  ;;  %v2874_v39 = vrot.slane %v2860_v46, %v3658_v16  ;;  %v4904_v16 = vld [vmem:[#allocation9_spill] sm:$0xff] }
 0x16e   : > { %v1315_v56 = vsel %vm359_vm0, %v4904_v16, %v4370_v47  ;;  %v3156_v47 = vld [vmem:[%s4846_s0 + $0x18] sm:$0xff] }
 0x16f   : > { %2916 = vrot.lane.b32.xlu0 %v2876_v18, %s3403_s4  ;;  %v4568_v0 = vpop.permute.xlu1 %1948  ;;  %v1324_v18 = vsel %vm363_vm2, %v1323_v37, %v4451_v54  ;;  %v2878_v28 = vcombine.high %v2874_v39, %v4881_v44  ;;  %v1316_v57 = vsel %vm361_vm1, %v1315_v56, %v4423_v12 }
 0x170   : > { %v1325_v31 = vsel %vm365_vm3, %v1324_v18, %v4507_v25  ;;  %v1317_v30 = vsel %vm363_vm2, %v1316_v57, %v4491_v23 }
 0x171   : > { %v4572_v7 = vpop.permute.xlu0 %1626  ;;  %2598 = vrot.lane.b32.xlu1 %v2544_v55, %s3405_s6  ;;  %v1326_v55 = vsel %vm367_vm4, %v1325_v31, %v1305_v14  ;;  %v2810_v14 = vcombine.high %v2806_v35, %v4881_v44  ;;  %v1318_v22 = vsel %vm365_vm3, %v1317_v30, %v4535_v59 }
 0x173   : > { %2566 = vrot.lane.b32.xlu0 %v2479_v1, %s3406_s7  ;;  %v1277_v53 = vpop.permute.xlu1 %1276 }
 0x174   : > { %v1319_v49 = vsel %vm367_vm4, %v1318_v22, %v1277_v53 }
 0x175   : > { %v985_v45 = vpop.permute.xlu0 %984  ;;  %2920 = vrot.lane.b32.xlu1 %v2867_v21, %s3404_s5 }
 0x176   : > { %v1021_v6 = vsel %vm371_vm6, %v1020_v58, %v985_v45  ;;  %v4905_v58 = vld [vmem:[#allocation10_spill] sm:$0xff] }
 0x177   : > { %2888 = vrot.lane.b32.xlu0 %v2808_v24, %s3403_s4  ;;  %3146 = vmatpush1.msk.msra.mxu0 %vm625_vm7, %v1021_v6  ;;  %v4597_v29 = vpop.permute.xlu1 %1598  ;;  %v1652_v45 = vsel %vm359_vm0, %v4905_v58, %v4443_v26 }
 0x178   : > { %3147 = vmatmul.mubr.msk.f32.vlgmr.msra.gmra.mxu0 %vm621_vm8, %v3144_v13  ;;  %v1653_v13 = vsel %vm361_vm1, %v1652_v45, %v4521_v62 }
 0x179   : > { %v1309_v40 = vpop.permute.xlu0 %1308  ;;  %1734 = vmatprep.mubr.f32.mxu0 %v4881_v44  ;;  %2602 = vrot.lane.b32.xlu1 %v2548_v51, %s3407_s8  ;;  %v1654_v32 = vsel %vm363_vm2, %v1653_v13, %v4572_v7 }
 0x17a   : > { %v1327_v42 = vsel %vm369_vm5, %v1326_v55, %v1309_v40 }
 0x17b   : > { %2570 = vrot.lane.b32.xlu0 %v2476_v4, %s3405_s6  ;;  %v4605_v61 = vpop.permute.xlu1 %1920 }
 0x17d   : > { %v1631_v48 = vpop.permute.xlu0 %1630  ;;  %2924 = vrot.lane.b32.xlu1 %v2877_v2, %s3406_s7 }
 0x17e   : > { %v1655_v51 = vsel %vm365_vm3, %v1654_v32, %v1631_v48  ;;  %v1646_v48 = vsel %vm361_vm1, %v1645_v19, %v4553_v52 }
 0x17f   : > { %2892 = vrot.lane.b32.xlu0 %v2799_v27, %s3404_s5  ;;  %v1281_v3 = vpop.permute.xlu1 %1280 }
 0x180   : > { %v1320_v34 = vsel %vm369_vm5, %v1319_v49, %v1281_v3 }
 0x181   : > { %v4619_v36 = vpop.permute.xlu0 %1952  ;;  %2896 = vrot.lane.b32.xlu1 %v2809_v41, %s3406_s7  ;;  %v1647_v41 = vsel %vm363_vm2, %v1646_v48, %v4597_v29 }
 0x183   : > { %2574 = vrot.lane.b32.xlu0 %v2480_v17, %s3407_s8  ;;  %v1603_v15 = vpop.permute.xlu1 %1602 }
 0x184   : > { %v1648_v46 = vsel %vm365_vm3, %v1647_v41, %v1603_v15 }
 0x185   : > { %v1313_v5 = vpop.permute.xlu0 %1312  ;;  %2900 = vrot.lane.b32.xlu1 %v2806_v35, %s3405_s6 }
 0x186   : > { %v1328_v54 = vsel %vm371_vm6, %v1327_v42, %v1313_v5  ;;  %v4907_v42 = vld [vmem:[#allocation14_spill] sm:$0xff] }
 0x187   : > { %2928 = vrot.lane.b32.xlu0 %v2874_v39, %s3405_s6  ;;  %3157 = vmatprep.subr.msk.mxu1 %vm625_vm7, %v1328_v54  ;;  %v4636_v25 = vpop.permute.xlu1 %1924  ;;  %v1982_v5 = vsel %vm359_vm0, %v4907_v42, %v4568_v0 }
 0x188   : > { %v1983_v54 = vsel %vm361_vm1, %v1982_v5, %v4619_v36  ;;  %v4908_v36 = vld [vmem:[#allocation17_spill] sm:$0xff] }
 0x189   : > { %v1635_v60 = vpop.permute.xlu0 %1634  ;;  %2904 = vrot.lane.b32.xlu1 %v2810_v14, %s3407_s8 }
 0x18a   : > { %v1656_v40 = vsel %vm367_vm4, %v1655_v51, %v1635_v60  ;;  %v4909_v51 = vld [vmem:[#allocation20_spill] sm:$0xff] }
 0x18b   : > { %2932 = vrot.lane.b32.xlu0 %v2878_v28, %s3407_s8  ;;  %v4645_v63 = vpop.permute.xlu1 %2248 }
 0x18d   : > { %v1957_v1 = vpop.permute.xlu0 %1956 }
 0x18e   : > { %v1984_v60 = vsel %vm363_vm2, %v1983_v54, %v1957_v1 }
 0x18f   : > { %v1607_v33 = vpop.permute.xlu1 %1606 }
 0x190   : > { %v1649_v37 = vsel %vm367_vm4, %v1648_v46, %v1607_v33  ;;  %v1975_v33 = vsel %vm359_vm0, %v4908_v36, %v4605_v61  ;;  %v3180_v61 = vld [vmem:[%s4846_s0 + $0x28] sm:$0xff] }
 0x191   : > { %v1285_v21 = vpop.permute.xlu0 %1284 }
 0x192   : > { %v1321_v43 = vsel %vm371_vm6, %v1320_v34, %v1285_v21  ;;  %v1976_v34 = vsel %vm361_vm1, %v1975_v33, %v4636_v25 }
 0x193   : > { %3158 = vmatpush1.msk.msra.mxu1 %vm625_vm7, %v1321_v43  ;;  %v1929_v12 = vpop.permute.xlu1 %1928 }
 0x194   : > { %3159 = vmatmul.mubr.msk.f32.vlgmr.msra.gmra.mxu1 %vm621_vm8, %v3156_v47  ;;  %v1977_v47 = vsel %vm363_vm2, %v1976_v34, %v1929_v12 }
 0x195   : > { %v1639_v23 = vpop.permute.xlu0 %1638  ;;  %2064 = vmatprep.mubr.f32.mxu1 %v4881_v44 }
 0x196   : > { %v1657_v2 = vsel %vm369_vm5, %v1656_v40, %v1639_v23  ;;  %v2282_v40 = vsel %vm359_vm0, %v4909_v51, %v4645_v63 }
 0x197   : > { %v4662_v59 = vpop.permute.xlu1 %2220 }
 0x199   : > { %v1961_v53 = vpop.permute.xlu0 %1960 }
 0x19a   : > { %v1985_v28 = vsel %vm365_vm3, %v1984_v60, %v1961_v53 }
 0x19b   : > { %v1611_v24 = vpop.permute.xlu1 %1610 }
 0x19c   : > { %v1650_v18 = vsel %vm369_vm5, %v1649_v37, %v1611_v24  ;;  %v4910_v37 = vld [vmem:[#allocation21_spill] sm:$0xff] }
 0x19d   : > { %v4669_v6 = vpop.permute.xlu0 %2252  ;;  %v2275_v63 = vsel %vm359_vm0, %v4910_v37, %v4662_v59  ;;  %v3192_v59 = vld [vmem:[%s4846_s0 + $0x30] sm:$0xff] }
 0x19f   : > { %v1933_v4 = vpop.permute.xlu1 %1932 }
 0x1a0   : > { %v1978_v43 = vsel %vm365_vm3, %v1977_v47, %v1933_v4 }
 0x1a1   : > { %v1643_v27 = vpop.permute.xlu0 %1642 }
 0x1a2   : > { %v1658_v10 = vsel %vm371_vm6, %v1657_v2, %v1643_v27  ;;  %v2283_v2 = vsel %vm361_vm1, %v2282_v40, %v4669_v6 }
 0x1a3   : > { %3169 = vmatprep.subr.msk.mxu0 %vm625_vm7, %v1658_v10  ;;  %v4678_v26 = vpop.permute.xlu1 %2224 }
 0x1a4   : > { %v2276_v6 = vsel %vm361_vm1, %v2275_v63, %v4678_v26 }
 0x1a5   : > { %v1965_v62 = vpop.permute.xlu0 %1964 }
 0x1a6   : > { %v1986_v16 = vsel %vm367_vm4, %v1985_v28, %v1965_v62 }
 0x1a7   : > { %v4683_v7 = vpop.permute.xlu1 %2578 }
 0x1a8   : > { %v2612_v5 = vsel %vm359_vm0, %v4259_v9, %v4683_v7 }
 0x1a9   : > { %v2257_v3 = vpop.permute.xlu0 %2256 }
 0x1aa   : > { %v2284_v10 = vsel %vm363_vm2, %v2283_v2, %v2257_v3  ;;  %v3216_v2 = vld [vmem:[%s4846_s0 + $0x40] sm:$0xff] }
 0x1ab   : > { %v1937_v17 = vpop.permute.xlu1 %1936 }
 0x1ac   : > { %v1979_v23 = vsel %vm367_vm4, %v1978_v43, %v1937_v17 }
 0x1ad   : > { %v1615_v31 = vpop.permute.xlu0 %1614 }
 0x1ae   : > { %v1651_v55 = vsel %vm371_vm6, %v1650_v18, %v1615_v31 }
 0x1af   : > { %3170 = vmatpush1.msk.msra.mxu0 %vm625_vm7, %v1651_v55  ;;  %v2229_v52 = vpop.permute.xlu1 %2228 }
 0x1b0   : > { %3171 = vmatmul.mubr.msk.f32.vlgmr.msra.gmra.mxu0 %vm621_vm8, %v3168_v8  ;;  %v2277_v17 = vsel %vm363_vm2, %v2276_v6, %v2229_v52 }
 0x1b1   : > { %v1969_v29 = vpop.permute.xlu0 %1968  ;;  %2364 = vmatprep.mubr.f32.mxu0 %v4881_v44 }
 0x1b2   : > { %v1987_v57 = vsel %vm369_vm5, %v1986_v16, %v1969_v29 }
 0x1b3   : > { %v4699_v15 = vpop.permute.xlu1 %2550 }
 0x1b4   : > { %v2605_v9 = vsel %vm359_vm0, %v4321_v38, %v4699_v15 }
 0x1b5   : > { %v2261_v35 = vpop.permute.xlu0 %2260 }
 0x1b6   : > { %v2285_v62 = vsel %vm365_vm3, %v2284_v10, %v2261_v35 }
 0x1b7   : > { %v1941_v39 = vpop.permute.xlu1 %1940 }
 0x1b8   : > { %v1980_v58 = vsel %vm369_vm5, %v1979_v23, %v1941_v39  ;;  %v3204_v23 = vld [vmem:[%s4846_s0 + $0x38] sm:$0xff] }
 0x1b9   : > { %v2583_v14 = vpop.permute.xlu0 %2582 }
 0x1ba   : > { %v2613_v39 = vsel %vm361_vm1, %v2612_v5, %v2583_v14 }
 0x1bb   : > { %v2233_v56 = vpop.permute.xlu1 %2232 }
 0x1bc   : > { %v2278_v31 = vsel %vm365_vm3, %v2277_v17, %v2233_v56 }
 0x1bd   : > { %v1973_v30 = vpop.permute.xlu0 %1972 }
 0x1be   : > { %v1988_v22 = vsel %vm371_vm6, %v1987_v57, %v1973_v30 }
 0x1bf   : > { %3181 = vmatprep.subr.msk.mxu1 %vm625_vm7, %v1988_v22  ;;  %v4712_v0 = vpop.permute.xlu1 %2554 }
 0x1c0   : > { %v2606_v14 = vsel %vm361_vm1, %v2605_v9, %v4712_v0 }
 0x1c1   : > { %v2265_v49 = vpop.permute.xlu0 %2264 }
 0x1c2   : > { %v2286_v11 = vsel %vm367_vm4, %v2285_v62, %v2265_v49 }
 0x1c3   : > { %v4717_v1 = vpop.permute.xlu1 %2908 }
 0x1c4   : > { %v2942_v0 = vsel %vm359_vm0, %v4407_v50, %v4717_v1 }
 0x1c5   : > { %v2587_v21 = vpop.permute.xlu0 %2586 }
 0x1c6   : > { %v2614_v60 = vsel %vm363_vm2, %v2613_v39, %v2587_v21 }
 0x1c7   : > { %v2237_v53 = vpop.permute.xlu1 %2236 }
 0x1c8   : > { %v2279_v8 = vsel %vm367_vm4, %v2278_v31, %v2237_v53 }
 0x1c9   : > { %v1945_v45 = vpop.permute.xlu0 %1944 }
 0x1ca   : > { %v1981_v24 = vsel %vm371_vm6, %v1980_v58, %v1945_v45 }
 0x1cb   : > { %3182 = vmatpush1.msk.msra.mxu1 %vm625_vm7, %v1981_v24  ;;  %v2559_v25 = vpop.permute.xlu1 %2558 }
 0x1cc   : > { %3183 = vmatmul.mubr.msk.f32.vlgmr.msra.gmra.mxu1 %vm621_vm8, %v3180_v61  ;;  %v2607_v36 = vsel %vm363_vm2, %v2606_v14, %v2559_v25 }
 0x1cd   : > { %v2269_v12 = vpop.permute.xlu0 %2268  ;;  %2694 = vmatprep.mubr.f32.mxu1 %v4881_v44 }
 0x1ce   : > { %v2287_v48 = vsel %vm369_vm5, %v2286_v11, %v2269_v12 }
 0x1cf   : > { %v2881_v13 = vpop.permute.xlu1 %2880 }
 0x1d0   : > { %v2935_v15 = vsel %vm359_vm0, %v4471_v20, %v2881_v13 }
 0x1d1   : > { %v2591_v32 = vpop.permute.xlu0 %2590 }
 0x1d2   : > { %v2615_v16 = vsel %vm365_vm3, %v2614_v60, %v2591_v32 }
 0x1d3   : > { %v2241_v4 = vpop.permute.xlu1 %2240 }
 0x1d4   : > { %v2280_v55 = vsel %vm369_vm5, %v2279_v8, %v2241_v4 }
 0x1d5   : > { %v2913_v27 = vpop.permute.xlu0 %2912 }
 0x1d6   : > { %v2943_v45 = vsel %vm361_vm1, %v2942_v0, %v2913_v27 }
 0x1d7   : > { %v2563_v19 = vpop.permute.xlu1 %2562 }
 0x1d8   : > { %v2608_v33 = vsel %vm365_vm3, %v2607_v36, %v2563_v19 }
 0x1d9   : > { %v2273_v41 = vpop.permute.xlu0 %2272 }
 0x1da   : > { %v2288_v46 = vsel %vm371_vm6, %v2287_v48, %v2273_v41 }
 0x1db   : > { %3193 = vmatprep.subr.msk.mxu0 %vm625_vm7, %v2288_v46  ;;  %v2885_v3 = vpop.permute.xlu1 %2884 }
 0x1dc   : > { %v2936_v53 = vsel %vm361_vm1, %v2935_v15, %v2885_v3 }
 0x1dd   : > { %v2595_v18 = vpop.permute.xlu0 %2594 }
 0x1de   : > { %v2616_v56 = vsel %vm367_vm4, %v2615_v16, %v2595_v18 }
 0x1df   : > { %v2245_v29 = vpop.permute.xlu1 %2244 }
 0x1e0   : > { %v2281_v35 = vsel %vm371_vm6, %v2280_v55, %v2245_v29 }
 0x1e1   : > { %v2917_v42 = vpop.permute.xlu0 %2916  ;;  %3194 = vmatpush1.msk.msra.mxu0 %vm625_vm7, %v2281_v35 }
 0x1e2   : > { %3195 = vmatmul.mubr.msk.f32.vlgmr.msra.gmra.mxu0 %vm621_vm8, %v3192_v59  ;;  %v2944_v25 = vsel %vm363_vm2, %v2943_v45, %v2917_v42 }
 0x1e3   : > { %v2599_v26 = vpop.permute.xlu1 %2598  ;;  %3024 = vmatprep.mubr.f32.mxu0 %v4881_v44 }
 0x1e4   : > { %v2617_v57 = vsel %vm369_vm5, %v2616_v56, %v2599_v26 }
 0x1e5   : > { %v2567_v52 = vpop.permute.xlu0 %2566 }
 0x1e6   : > { %v2609_v34 = vsel %vm367_vm4, %v2608_v33, %v2567_v52 }
 0x1e7   : > { %v2921_v54 = vpop.permute.xlu1 %2920 }
 0x1e8   : > { %v2945_v12 = vsel %vm365_vm3, %v2944_v25, %v2921_v54 }
 0x1e9   : > { %v2889_v28 = vpop.permute.xlu0 %2888 }
 0x1ea   : > { %v2937_v61 = vsel %vm363_vm2, %v2936_v53, %v2889_v28 }
 0x1eb   : > { %v2603_v30 = vpop.permute.xlu1 %2602 }
 0x1ec   : > { %v2618_v44 = vsel %vm371_vm6, %v2617_v57, %v2603_v30 }
 0x1ed   : > { %v2571_v22 = vpop.permute.xlu0 %2570  ;;  %3205 = vmatprep.subr.msk.mxu1 %vm625_vm7, %v2618_v44 }
 0x1ee   : > { %v2610_v47 = vsel %vm369_vm5, %v2609_v34, %v2571_v22 }
 0x1ef   : > { %v2925_v7 = vpop.permute.xlu1 %2924 }
 0x1f0   : > { %v2946_v13 = vsel %vm367_vm4, %v2945_v12, %v2925_v7 }
 0x1f1   : > { %v2893_v49 = vpop.permute.xlu0 %2892 }
 0x1f2   : > { %v2938_v20 = vsel %vm365_vm3, %v2937_v61, %v2893_v49 }
 0x1f3   : > { %v2897_v21 = vpop.permute.xlu1 %2896 }
 0x1f4   : > { %v2939_v50 = vsel %vm367_vm4, %v2938_v20, %v2897_v21 }
 0x1f5   : > { %v2575_v43 = vpop.permute.xlu0 %2574 }
 0x1f6   : > { %v2611_v38 = vsel %vm371_vm6, %v2610_v47, %v2575_v43 }
 0x1f7   : > { %3206 = vmatpush1.msk.msra.mxu1 %vm625_vm7, %v2611_v38  ;;  %v2901_v58 = vpop.permute.xlu1 %2900 }
 0x1f8   : > { %3207 = vmatmul.mubr.msk.f32.vlgmr.msra.gmra.mxu1 %vm621_vm8, %v3204_v23  ;;  %v2940_v40 = vsel %vm369_vm5, %v2939_v50, %v2901_v58 }
 0x1f9   : > { %v2929_v24 = vpop.permute.xlu0 %2928 }
 0x1fa   : > { %v2947_v1 = vsel %vm369_vm5, %v2946_v13, %v2929_v24 }
 0x1fb   : > { %v2905_v32 = vpop.permute.xlu1 %2904 }
 0x1fc   : > { %v2941_v27 = vsel %vm371_vm6, %v2940_v40, %v2905_v32 }
 0x1fd   : > { %v2933_v51 = vpop.permute.xlu0 %2932 }
 0x1fe   : > { %v2948_v4 = vsel %vm371_vm6, %v2947_v1, %v2933_v51 }
 0x1ff   : > { %3217 = vmatprep.subr.msk.mxu0 %vm625_vm7, %v2948_v4 }
 0x200   : > { %3218 = vmatpush1.msk.msra.mxu0 %vm625_vm7, %v2941_v27 }
 0x201   : > { %3219 = vmatmul.mubr.msk.f32.vlgmr.msra.gmra.mxu0 %vm621_vm8, %v3216_v2 }
 0x204   : > { %v698_v10 = vpop.f32.mrf.mxu0 }
 0x206   : > { %v700_v62 = vpop.f32.mrf.mxu0 }
 0x21c   : > { %v778_v11 = vpop.f32.mrf.mxu1 }
 0x21d   : > { %v779_v41 = vadd.f32 %v778_v11, %v698_v10 }
 0x21e   : > { %v780_v19 = vpop.f32.mrf.mxu1 }
 0x21f   : > { %v781_v46 = vadd.f32 %v780_v19, %v700_v62 }
 0x238   : > { %v1106_v48 = vpop.f32.mrf.mxu0 }
 0x239   : > { %v1111_v6 = vadd.f32 %v1106_v48, %v779_v41 }
 0x23a   : > { %v1108_v37 = vpop.f32.mrf.mxu0 }
 0x23b   : > { %v1112_v3 = vadd.f32 %v1108_v37, %v781_v46 }
 0x254   : > { %v1406_v63 = vpop.f32.mrf.mxu1 }
 0x255   : > { %v1411_v31 = vadd.f32 %v1406_v63, %v1111_v6 }
 0x256   : > { %v1408_v17 = vpop.f32.mrf.mxu1 }
 0x257   : > { %v1412_v8 = vadd.f32 %v1408_v17, %v1112_v3 }
 0x270   : > { %v1736_v18 = vpop.f32.mrf.mxu0 }
 0x271   : > { %v1741_v59 = vadd.f32 %v1736_v18, %v1411_v31 }
 0x272   : > { %v1738_v55 = vpop.f32.mrf.mxu0 }
 0x273   : > { %v1742_v35 = vadd.f32 %v1738_v55, %v1412_v8 }
 0x28c   : > { %v2066_v29 = vpop.f32.mrf.mxu1 }
 0x28d   : > { %v2071_v52 = vadd.f32 %v2066_v29, %v1741_v59 }
 0x28e   : > { %v2068_v42 = vpop.f32.mrf.mxu1 }
 0x28f   : > { %v2072_v5 = vadd.f32 %v2068_v42, %v1742_v35 }
 0x2a2   : > { %v2366_v26 = vpop.f32.mrf.mxu0 }
 0x2a3   : > { %v2371_v60 = vadd.f32 %v2366_v26, %v2071_v52 }
 0x2a4   : > { %v2368_v39 = vpop.f32.mrf.mxu0 }
 0x2a5   : > { %v2372_v28 = vadd.f32 %v2368_v39, %v2072_v5 }
 0x2b8   : > { %v2696_v54 = vpop.f32.mrf.mxu1 }
 0x2b9   : > { %v2701_v56 = vadd.f32 %v2696_v54, %v2371_v60 }
 0x2ba   : > { %v2698_v16 = vpop.f32.mrf.mxu1 }
 0x2bb   : > { %v2702_v30 = vadd.f32 %v2698_v16, %v2372_v28 }
 0x2c1   : > { %v3026_v57 = vpop.f32.mrf.mxu0 }
 0x2c2   : > { %v3031_v44 = vadd.f32 %v3026_v57, %v2701_v56 }
 0x2c3   : > { %v3028_v22 = vpop.f32.mrf.mxu0 }
 0x2c4   : > { %3033 = vst [vmem:[%s150_s20] sm:$0xff] %v3031_v44  ;;  %v3032_v9 = vadd.f32 %v3028_v22, %v2702_v30 }
 0x2c6   : > { %3034 = vst [vmem:[%s150_s20 + $0x8] sm:$0xff] %v3032_v9 }
 0x2c7   : > { %3331 = shalt.err (!%p3328_p5)
}
 0x2c8   : > { %s3332_s3 = scalar_lea.hbm %s3050_s26, 256  ;;  %s3336_s6 = scalar_lea.hbm %s4848_s2, 512 }
 0x2c9   : > { %p3333_p6 = scmp.ne.s32.totalorder %s3050_s26, %s3332_s3  ;;  %p3337_p10 = scmp.lt.s32.totalorder %s3050_s26, %s4848_s2 }
 0x2ca   : > { %p3338_p11 = scmp.lt.s32.totalorder %s3336_s6, %s3332_s3 }
 0x2cb   : > { %p3334_p7 = pnand %p3333_p6, %p3464_p4 }
 0x2cc   : > { %p3339_p12 = por %p3338_p11, %p3337_p10 }
 0x2cd   : > { %p3335_p9 = pneg %p3334_p7 }
 0x2cf   : > { %p3340_p13 = pnand %p3339_p12, %p3335_p9 }
 0x2d1   : > { %3343 = shalt.err (!%p3340_p13)
}
 0x2d2   : > { %3227 = dma.vmem_to_hbm [thread:$0]  (%p3464_p4), %s3053_s23, 256, %s3050_s26, %s3036_s27  }
 0x2d3 PF: > { %p3233_p0 = scmp.ge.s32.totalorder %s3394_s14, 2  ;;  %s3064_s15 = sand.u32 1, %s3374_s9  }
 0x2d4   : > { %s3065_s16 = scalar_lea.sflag [#allocation3], %s3064_s15 }
 0x2d5   : > { %p3230_p1 = pnand %p3233_p0, %p3471_p8 }
 0x2d7   : > { %p3231_p2 = pneg %p3230_p1 }
 0x2d9   : > { %3369 = dma.done.wait (%p3231_p2), %s3065_s16, 256  }
 0x2da   : > { %3371 = vsyncadd (%p3231_p2), %s3065_s16, 4294967040  ;;  %s15_s14 = sadd.s32 1, %s3394_s14   ;;  %s4911_s9 = smov %s3378_s10 }
 0x2db   : > { %p12_p3 = scmp.ge.s32.totalorder %s15_s14, 4   ;;  %s4912_s10 = smov %s3382_s11 }
 0x2dc   : > { %s4913_s11 = smov %s3477_s22  ;;  %s4914_s12 = smov %s3390_s13 }
 0x2dd   : > { %s4915_s13 = smov %s4917_s17  ;;  %14 = sbr.rel (!%p12_p3) target bundleno = 4 (0x4), region = 74 }
 0x2e2   :  { %3070 = vsyncpa [#allocation3], 1 }
 0x2e3   :  { %3072 = vsyncpa [#allocation3 + $0x1], 1 }

</bundles_post_ra>
